<compile_context>
chip_gen: v7x
topology: tpu7x:2x2x1
jax: 0.10.0
libtpu: 0.0.40
codegen_flags: <defaults>
</compile_context>

<pallas_src>
import functools

import jax
import jax.numpy as jnp
from jax import lax
from jax.experimental import pallas as pl
from jax.experimental.pallas import tpu as pltpu


# ----------------------------- Pallas kernel ------------------------------ #
def mtb_fused_kernel(xq_ref, w1_ref, aux1_ref, w2_ref, aux2_ref, o_ref,
                     *, cin, c1, c2, h_out, w_out, g_w):
    """Fused [conv3x3 s2 p1 -> ReLU -> BN] x 2 + final (W, H*C) layout.

    xq_ref  : (1, Gh*Gw, 16*cin) bf16   space-to-depth(4) of the padded input:
              xq[i*Gw + j, (r*4+s)*cin + c] = x_pad[4i+r, 4j+s, c]
    w1_ref  : (9*cin, c1) bf16          conv1 weight, rows = (ky, kx, cin)
    aux1_ref: (3, c1) f32               rows = [conv bias, bn scale, bn shift]
    w2_ref  : (9*c1, c2) bf16           conv2 weight, rows = (ky, kx, c1)
    aux2_ref: (3, c2) f32
    o_ref   : (1, w_out, h_out*c2) f32  final layout out[w, h*c2 + c]
    """
    f32 = jnp.float32
    bf16 = jnp.bfloat16
    xq = xq_ref[0].astype(f32)                       # (Gh*Gw, 16*cin)
    taps = [(ky, kx) for ky in range(3) for kx in range(3)]
    gsz = h_out * w_out                              # rows per parity group

    # ---- layer 1: im2col patches, rows grouped by layer-1 output parity ----
    # group (A, B): output positions (oh, ow) = (2u + A, 2v + B),
    # row order inside a group is u * w_out + v.
    group_blocks = []
    for A in (0, 1):
        for B in (0, 1):
            tap_cols = []
            for (ky, kx) in taps:
                m = 2 * A + ky                       # padded input row = 4u + m
                n_ = 2 * B + kx                      # padded input col = 4v + n_
                rho, dy = m % 4, m // 4
                sig, dx = n_ % 4, n_ // 4
                lane0 = (rho * 4 + sig) * cin
                strips = []
                for u in range(h_out):
                    row0 = (u + dy) * g_w + dx
                    strips.append(xq[row0:row0 + w_out, lane0:lane0 + cin])
                tap_cols.append(jnp.concatenate(strips, axis=0))   # (gsz, cin)
            group_blocks.append(jnp.concatenate(tap_cols, axis=1))  # (gsz, 9*cin)
    p1 = jnp.concatenate(group_blocks, axis=0)                      # (4*gsz, 9*cin)

    b1, s1, t1 = aux1_ref[0:1, :], aux1_ref[1:2, :], aux1_ref[2:3, :]
    a1 = jnp.dot(p1.astype(bf16), w1_ref[...], preferred_element_type=f32)
    y1 = jnp.maximum(a1 + b1, 0.0) * s1 + t1                        # (4*gsz, c1) f32

    # parity blocks of the layer-1 activation (kept in VMEM/vregs only)
    yblk = {(a, b): y1[(2 * a + b) * gsz:(2 * a + b + 1) * gsz, :]
            for a in (0, 1) for b in (0, 1)}

    # ---- layer 2: patches for conv2 (rows = (oh2, ow2) row-major) ----------
    # needed y1 element for output (oh2, ow2), tap (ky, kx):
    #   row = 2*oh2 + ky - 1, col = 2*ow2 + kx - 1   (zero outside y1)
    zero_row = jnp.zeros((1, c1), f32)
    zero_strip = jnp.zeros((w_out, c1), f32)
    tap_cols2 = []
    for (ky, kx) in taps:
        a = (ky + 1) % 2
        b = (kx + 1) % 2
        dy = -1 if ky == 0 else 0
        dx = -1 if kx == 0 else 0
        yab = yblk[(a, b)]
        strips = []
        for oh in range(h_out):
            i = oh + dy
            if i < 0:
                strips.append(zero_strip)
            elif dx == 0:
                strips.append(yab[i * w_out:(i + 1) * w_out, :])
            else:  # left zero pad, shift by one output column
                strips.append(jnp.concatenate(
                    [zero_row, yab[i * w_out:i * w_out + w_out - 1, :]], axis=0))
        tap_cols2.append(jnp.concatenate(strips, axis=0))           # (gsz, c1)
    p2 = jnp.concatenate(tap_cols2, axis=1)                         # (gsz, 9*c1)

    b2, s2, t2 = aux2_ref[0:1, :], aux2_ref[1:2, :], aux2_ref[2:3, :]
    a2 = jnp.dot(p2.astype(bf16), w2_ref[...], preferred_element_type=f32)
    y2 = jnp.maximum(a2 + b2, 0.0) * s2 + t2                        # (gsz, c2) f32

    # ---- final layout: out[w, h*c2 + c] = y2[h*w_out + w, c] ----------------
    o_ref[0] = jnp.concatenate(
        [y2[h * w_out:(h + 1) * w_out, :] for h in range(h_out)], axis=1)


# ------------------------------- wrapper ----------------------------------- #
def mtb_forward(images_nchw, params):
    """images_nchw: (N, Cin, H, W) f32 -> (N, W/4, (H/4)*64) f32."""
    N, Cin, H, W = images_nchw.shape
    assert H % 4 == 0 and W % 4 == 0, "demo kernel requires H, W divisible by 4"
    C1 = params[0]["w_mat"].shape[1]
    C2 = params[1]["w_mat"].shape[1]
    H2, W2 = H // 4, W // 4                      # final spatial dims
    Gh, Gw = H // 4 + 1, W // 4 + 1              # space-to-depth(4) grid

    # NCHW -> NHWC, conv padding (1 left/top) + extra zeros to a multiple of 4.
    x = jnp.transpose(images_nchw, (0, 2, 3, 1))
    xp = jnp.pad(x, ((0, 0), (1, 3), (1, 3), (0, 0)))           # (N, H+4, W+4, Cin)
    # space-to-depth(4): same byte count as the input, no im2col duplication.
    xq = xp.reshape(N, Gh, 4, Gw, 4, Cin).transpose(0, 1, 3, 2, 4, 5)
    xq = xq.reshape(N, Gh * Gw, 16 * Cin).astype(jnp.bfloat16)

    kernel = functools.partial(
        mtb_fused_kernel, cin=Cin, c1=C1, c2=C2, h_out=H2, w_out=W2, g_w=Gw)

    return pl.pallas_call(
        kernel,
        out_shape=jax.ShapeDtypeStruct((N, W2, H2 * C2), jnp.float32),
        grid_spec=pltpu.PrefetchScalarGridSpec(
            num_scalar_prefetch=0,
            grid=(N,),
            in_specs=[
                pl.BlockSpec((1, Gh * Gw, 16 * Cin), lambda n: (n, 0, 0)),
                pl.BlockSpec((9 * Cin, C1), lambda n: (0, 0)),   # resident
                pl.BlockSpec((3, C1), lambda n: (0, 0)),         # resident
                pl.BlockSpec((9 * C1, C2), lambda n: (0, 0)),    # resident
                pl.BlockSpec((3, C2), lambda n: (0, 0)),         # resident
            ],
            out_specs=pl.BlockSpec((1, W2, H2 * C2), lambda n: (n, 0, 0)),
        ),
        compiler_params=pltpu.CompilerParams(
            dimension_semantics=("parallel",)),
    )(xq, params[0]["w_mat"], params[0]["aux"],
      params[1]["w_mat"], params[1]["aux"])


# ------------------------------ parameters --------------------------------- #
def init_params(key, in_channels):
    """Deterministic params mirroring MTB(__init__) shapes (cnn_num=2)."""
    params = []
    cin = in_channels
    for i in range(2):
        cout = 32 * 2 ** i
        key, kw, kb, kg, kbeta = jax.random.split(key, 5)
        w_pt = jax.random.normal(kw, (cout, cin, 3, 3), jnp.float32) * 0.05
        b = jax.random.normal(kb, (cout,), jnp.float32) * 0.05
        gamma = 1.0 + 0.1 * jax.random.normal(kg, (cout,), jnp.float32)
        beta = 0.1 * jax.random.normal(kbeta, (cout,), jnp.float32)
        # Inference-mode BatchNorm: running_mean=0, running_var=1, eps=1e-5.
        running_mean = jnp.zeros((cout,), jnp.float32)
        running_var = jnp.ones((cout,), jnp.float32)
        eps = 1e-5
        scale = gamma / jnp.sqrt(running_var + eps)
        shift = beta - running_mean * scale
        # (Cout, Cin, 3, 3) -> (ky, kx, cin, cout)
        w_kkio = jnp.transpose(w_pt, (2, 3, 1, 0))
        params.append(dict(
            w_mat=w_kkio.reshape(9 * cin, cout).astype(jnp.bfloat16),  # kernel
            w_hwio=w_kkio,                                             # reference
            aux=jnp.stack([b, scale, shift], axis=0),                  # (3, cout)
            b=b, scale=scale, shift=shift,
        ))
        cin = cout
    return params


# ------------------------------ reference ---------------------------------- #
def reference_forward(images_nchw, params):
    """Pure-JAX f32 reference of the MTB forward pass."""
    x = jnp.transpose(images_nchw, (0, 2, 3, 1))     # NHWC
    for p in params:
        x = lax.conv_general_dilated(
            x, p["w_hwio"], window_strides=(2, 2), padding=((1, 1), (1, 1)),
            dimension_numbers=("NHWC", "HWIO", "NHWC"))
        x = jnp.maximum(x + p["b"], 0.0) * p["scale"] + p["shift"]
    N, Hh, Ww, C = x.shape
    # NCHW.permute(0,3,2,1) == NHWC.transpose(0,2,1,3) -> (N, W, H*C)
    return jnp.transpose(x, (0, 2, 1, 3)).reshape(N, Ww, Hh * C)


# --------------------------------- main ------------------------------------ #
if __name__ == "__main__":
    key = jax.random.PRNGKey(0)
    key, kimg = jax.random.split(key)

    N, Cin, H, W = 2, 4, 16, 16
    images = jax.random.normal(kimg, (N, Cin, H, W), jnp.float32)
    params = init_params(key, Cin)

    out = mtb_forward(images, params)
    out = jax.block_until_ready(out)

    assert out.shape == (N, W // 4, (H // 4) * 64), out.shape
    assert out.dtype == jnp.float32

    ref = reference_forward(images, params)
    err = float(jnp.max(jnp.abs(out - ref)))
    assert err < 5e-2, f"max abs err vs reference: {err}"

    print("KERNEL_OK")
</pallas_src>

<mosaic_0001>
module attributes {stable_mosaic.version = 11 : i64} {
  func.func @mtb_fused_kernel(%arg0: i32, %arg1: memref<1x25x64xbf16, #tpu.memory_space<vmem>>, %arg2: memref<36x32xbf16, #tpu.memory_space<vmem>>, %arg3: memref<3x32xf32, #tpu.memory_space<vmem>>, %arg4: memref<288x64xbf16, #tpu.memory_space<vmem>>, %arg5: memref<3x64xf32, #tpu.memory_space<vmem>>, %arg6: memref<1x4x256xf32, #tpu.memory_space<vmem>>) attributes {dimension_semantics = [#tpu.dimension_semantics<parallel>], iteration_bounds = array<i64: 2>, scalar_prefetch = 0 : i64, scratch_operands = 0 : i64, tpu.core_type = #tpu.core_type<tc>, window_params = [{transform_indices = @transform_0, window_bounds = array<i64: 1, 25, 64>}, {pipeline_mode = #tpu.pipeline_mode<synchronous>, transform_indices = @transform_1, window_bounds = array<i64: 36, 32>}, {pipeline_mode = #tpu.pipeline_mode<synchronous>, transform_indices = @transform_2, window_bounds = array<i64: 3, 32>}, {pipeline_mode = #tpu.pipeline_mode<synchronous>, transform_indices = @transform_3, window_bounds = array<i64: 288, 64>}, {pipeline_mode = #tpu.pipeline_mode<synchronous>, transform_indices = @transform_4, window_bounds = array<i64: 3, 64>}, {transform_indices = @transform_5, window_bounds = array<i64: 1, 4, 256>}]} {
    %c0 = arith.constant 0 : index
    %c0_0 = arith.constant 0 : index
    %c0_1 = arith.constant 0 : index
    %0 = vector.load %arg1[%c0, %c0_0, %c0_1] : memref<1x25x64xbf16, #tpu.memory_space<vmem>>, vector<1x25x64xbf16>
    %1 = vector.shape_cast %0 : vector<1x25x64xbf16> to vector<25x64xbf16>
    %2 = arith.extf %1 : vector<25x64xbf16> to vector<25x64xf32>
    %3 = vector.extract_strided_slice %2 {offsets = [0, 0], sizes = [4, 4], strides = [1, 1]} : vector<25x64xf32> to vector<4x4xf32>
    %4 = vector.extract_strided_slice %2 {offsets = [5, 0], sizes = [4, 4], strides = [1, 1]} : vector<25x64xf32> to vector<4x4xf32>
    %5 = vector.extract_strided_slice %2 {offsets = [10, 0], sizes = [4, 4], strides = [1, 1]} : vector<25x64xf32> to vector<4x4xf32>
    %6 = vector.extract_strided_slice %2 {offsets = [15, 0], sizes = [4, 4], strides = [1, 1]} : vector<25x64xf32> to vector<4x4xf32>
    %7 = tpu.concatenate %3, %4, %5, %6 in 0 : vector<4x4xf32>, vector<4x4xf32>, vector<4x4xf32>, vector<4x4xf32> -> vector<16x4xf32>
    %8 = vector.extract_strided_slice %2 {offsets = [0, 4], sizes = [4, 4], strides = [1, 1]} : vector<25x64xf32> to vector<4x4xf32>
    %9 = vector.extract_strided_slice %2 {offsets = [5, 4], sizes = [4, 4], strides = [1, 1]} : vector<25x64xf32> to vector<4x4xf32>
    %10 = vector.extract_strided_slice %2 {offsets = [10, 4], sizes = [4, 4], strides = [1, 1]} : vector<25x64xf32> to vector<4x4xf32>
    %11 = vector.extract_strided_slice %2 {offsets = [15, 4], sizes = [4, 4], strides = [1, 1]} : vector<25x64xf32> to vector<4x4xf32>
    %12 = tpu.concatenate %8, %9, %10, %11 in 0 : vector<4x4xf32>, vector<4x4xf32>, vector<4x4xf32>, vector<4x4xf32> -> vector<16x4xf32>
    %13 = vector.extract_strided_slice %2 {offsets = [0, 8], sizes = [4, 4], strides = [1, 1]} : vector<25x64xf32> to vector<4x4xf32>
    %14 = vector.extract_strided_slice %2 {offsets = [5, 8], sizes = [4, 4], strides = [1, 1]} : vector<25x64xf32> to vector<4x4xf32>
    %15 = vector.extract_strided_slice %2 {offsets = [10, 8], sizes = [4, 4], strides = [1, 1]} : vector<25x64xf32> to vector<4x4xf32>
    %16 = vector.extract_strided_slice %2 {offsets = [15, 8], sizes = [4, 4], strides = [1, 1]} : vector<25x64xf32> to vector<4x4xf32>
    %17 = tpu.concatenate %13, %14, %15, %16 in 0 : vector<4x4xf32>, vector<4x4xf32>, vector<4x4xf32>, vector<4x4xf32> -> vector<16x4xf32>
    %18 = vector.extract_strided_slice %2 {offsets = [0, 16], sizes = [4, 4], strides = [1, 1]} : vector<25x64xf32> to vector<4x4xf32>
    %19 = vector.extract_strided_slice %2 {offsets = [5, 16], sizes = [4, 4], strides = [1, 1]} : vector<25x64xf32> to vector<4x4xf32>
    %20 = vector.extract_strided_slice %2 {offsets = [10, 16], sizes = [4, 4], strides = [1, 1]} : vector<25x64xf32> to vector<4x4xf32>
    %21 = vector.extract_strided_slice %2 {offsets = [15, 16], sizes = [4, 4], strides = [1, 1]} : vector<25x64xf32> to vector<4x4xf32>
    %22 = tpu.concatenate %18, %19, %20, %21 in 0 : vector<4x4xf32>, vector<4x4xf32>, vector<4x4xf32>, vector<4x4xf32> -> vector<16x4xf32>
    %23 = vector.extract_strided_slice %2 {offsets = [0, 20], sizes = [4, 4], strides = [1, 1]} : vector<25x64xf32> to vector<4x4xf32>
    %24 = vector.extract_strided_slice %2 {offsets = [5, 20], sizes = [4, 4], strides = [1, 1]} : vector<25x64xf32> to vector<4x4xf32>
    %25 = vector.extract_strided_slice %2 {offsets = [10, 20], sizes = [4, 4], strides = [1, 1]} : vector<25x64xf32> to vector<4x4xf32>
    %26 = vector.extract_strided_slice %2 {offsets = [15, 20], sizes = [4, 4], strides = [1, 1]} : vector<25x64xf32> to vector<4x4xf32>
    %27 = tpu.concatenate %23, %24, %25, %26 in 0 : vector<4x4xf32>, vector<4x4xf32>, vector<4x4xf32>, vector<4x4xf32> -> vector<16x4xf32>
    %28 = vector.extract_strided_slice %2 {offsets = [0, 24], sizes = [4, 4], strides = [1, 1]} : vector<25x64xf32> to vector<4x4xf32>
    %29 = vector.extract_strided_slice %2 {offsets = [5, 24], sizes = [4, 4], strides = [1, 1]} : vector<25x64xf32> to vector<4x4xf32>
    %30 = vector.extract_strided_slice %2 {offsets = [10, 24], sizes = [4, 4], strides = [1, 1]} : vector<25x64xf32> to vector<4x4xf32>
    %31 = vector.extract_strided_slice %2 {offsets = [15, 24], sizes = [4, 4], strides = [1, 1]} : vector<25x64xf32> to vector<4x4xf32>
    %32 = tpu.concatenate %28, %29, %30, %31 in 0 : vector<4x4xf32>, vector<4x4xf32>, vector<4x4xf32>, vector<4x4xf32> -> vector<16x4xf32>
    %33 = vector.extract_strided_slice %2 {offsets = [0, 32], sizes = [4, 4], strides = [1, 1]} : vector<25x64xf32> to vector<4x4xf32>
    %34 = vector.extract_strided_slice %2 {offsets = [5, 32], sizes = [4, 4], strides = [1, 1]} : vector<25x64xf32> to vector<4x4xf32>
    %35 = vector.extract_strided_slice %2 {offsets = [10, 32], sizes = [4, 4], strides = [1, 1]} : vector<25x64xf32> to vector<4x4xf32>
    %36 = vector.extract_strided_slice %2 {offsets = [15, 32], sizes = [4, 4], strides = [1, 1]} : vector<25x64xf32> to vector<4x4xf32>
    %37 = tpu.concatenate %33, %34, %35, %36 in 0 : vector<4x4xf32>, vector<4x4xf32>, vector<4x4xf32>, vector<4x4xf32> -> vector<16x4xf32>
    %38 = vector.extract_strided_slice %2 {offsets = [0, 36], sizes = [4, 4], strides = [1, 1]} : vector<25x64xf32> to vector<4x4xf32>
    %39 = vector.extract_strided_slice %2 {offsets = [5, 36], sizes = [4, 4], strides = [1, 1]} : vector<25x64xf32> to vector<4x4xf32>
    %40 = vector.extract_strided_slice %2 {offsets = [10, 36], sizes = [4, 4], strides = [1, 1]} : vector<25x64xf32> to vector<4x4xf32>
    %41 = vector.extract_strided_slice %2 {offsets = [15, 36], sizes = [4, 4], strides = [1, 1]} : vector<25x64xf32> to vector<4x4xf32>
    %42 = tpu.concatenate %38, %39, %40, %41 in 0 : vector<4x4xf32>, vector<4x4xf32>, vector<4x4xf32>, vector<4x4xf32> -> vector<16x4xf32>
    %43 = vector.extract_strided_slice %2 {offsets = [0, 40], sizes = [4, 4], strides = [1, 1]} : vector<25x64xf32> to vector<4x4xf32>
    %44 = vector.extract_strided_slice %2 {offsets = [5, 40], sizes = [4, 4], strides = [1, 1]} : vector<25x64xf32> to vector<4x4xf32>
    %45 = vector.extract_strided_slice %2 {offsets = [10, 40], sizes = [4, 4], strides = [1, 1]} : vector<25x64xf32> to vector<4x4xf32>
    %46 = vector.extract_strided_slice %2 {offsets = [15, 40], sizes = [4, 4], strides = [1, 1]} : vector<25x64xf32> to vector<4x4xf32>
    %47 = tpu.concatenate %43, %44, %45, %46 in 0 : vector<4x4xf32>, vector<4x4xf32>, vector<4x4xf32>, vector<4x4xf32> -> vector<16x4xf32>
    %48 = tpu.concatenate %7, %12, %17, %22, %27, %32, %37, %42, %47 in 1 : vector<16x4xf32>, vector<16x4xf32>, vector<16x4xf32>, vector<16x4xf32>, vector<16x4xf32>, vector<16x4xf32>, vector<16x4xf32>, vector<16x4xf32>, vector<16x4xf32> -> vector<16x36xf32>
    %49 = vector.extract_strided_slice %2 {offsets = [0, 8], sizes = [4, 4], strides = [1, 1]} : vector<25x64xf32> to vector<4x4xf32>
    %50 = vector.extract_strided_slice %2 {offsets = [5, 8], sizes = [4, 4], strides = [1, 1]} : vector<25x64xf32> to vector<4x4xf32>
    %51 = vector.extract_strided_slice %2 {offsets = [10, 8], sizes = [4, 4], strides = [1, 1]} : vector<25x64xf32> to vector<4x4xf32>
    %52 = vector.extract_strided_slice %2 {offsets = [15, 8], sizes = [4, 4], strides = [1, 1]} : vector<25x64xf32> to vector<4x4xf32>
    %53 = tpu.concatenate %49, %50, %51, %52 in 0 : vector<4x4xf32>, vector<4x4xf32>, vector<4x4xf32>, vector<4x4xf32> -> vector<16x4xf32>
    %54 = vector.extract_strided_slice %2 {offsets = [0, 12], sizes = [4, 4], strides = [1, 1]} : vector<25x64xf32> to vector<4x4xf32>
    %55 = vector.extract_strided_slice %2 {offsets = [5, 12], sizes = [4, 4], strides = [1, 1]} : vector<25x64xf32> to vector<4x4xf32>
    %56 = vector.extract_strided_slice %2 {offsets = [10, 12], sizes = [4, 4], strides = [1, 1]} : vector<25x64xf32> to vector<4x4xf32>
    %57 = vector.extract_strided_slice %2 {offsets = [15, 12], sizes = [4, 4], strides = [1, 1]} : vector<25x64xf32> to vector<4x4xf32>
    %58 = tpu.concatenate %54, %55, %56, %57 in 0 : vector<4x4xf32>, vector<4x4xf32>, vector<4x4xf32>, vector<4x4xf32> -> vector<16x4xf32>
    %59 = vector.extract_strided_slice %2 {offsets = [1, 0], sizes = [4, 4], strides = [1, 1]} : vector<25x64xf32> to vector<4x4xf32>
    %60 = vector.extract_strided_slice %2 {offsets = [6, 0], sizes = [4, 4], strides = [1, 1]} : vector<25x64xf32> to vector<4x4xf32>
    %61 = vector.extract_strided_slice %2 {offsets = [11, 0], sizes = [4, 4], strides = [1, 1]} : vector<25x64xf32> to vector<4x4xf32>
    %62 = vector.extract_strided_slice %2 {offsets = [16, 0], sizes = [4, 4], strides = [1, 1]} : vector<25x64xf32> to vector<4x4xf32>
    %63 = tpu.concatenate %59, %60, %61, %62 in 0 : vector<4x4xf32>, vector<4x4xf32>, vector<4x4xf32>, vector<4x4xf32> -> vector<16x4xf32>
    %64 = vector.extract_strided_slice %2 {offsets = [0, 24], sizes = [4, 4], strides = [1, 1]} : vector<25x64xf32> to vector<4x4xf32>
    %65 = vector.extract_strided_slice %2 {offsets = [5, 24], sizes = [4, 4], strides = [1, 1]} : vector<25x64xf32> to vector<4x4xf32>
    %66 = vector.extract_strided_slice %2 {offsets = [10, 24], sizes = [4, 4], strides = [1, 1]} : vector<25x64xf32> to vector<4x4xf32>
    %67 = vector.extract_strided_slice %2 {offsets = [15, 24], sizes = [4, 4], strides = [1, 1]} : vector<25x64xf32> to vector<4x4xf32>
    %68 = tpu.concatenate %64, %65, %66, %67 in 0 : vector<4x4xf32>, vector<4x4xf32>, vector<4x4xf32>, vector<4x4xf32> -> vector<16x4xf32>
    %69 = vector.extract_strided_slice %2 {offsets = [0, 28], sizes = [4, 4], strides = [1, 1]} : vector<25x64xf32> to vector<4x4xf32>
    %70 = vector.extract_strided_slice %2 {offsets = [5, 28], sizes = [4, 4], strides = [1, 1]} : vector<25x64xf32> to vector<4x4xf32>
    %71 = vector.extract_strided_slice %2 {offsets = [10, 28], sizes = [4, 4], strides = [1, 1]} : vector<25x64xf32> to vector<4x4xf32>
    %72 = vector.extract_strided_slice %2 {offsets = [15, 28], sizes = [4, 4], strides = [1, 1]} : vector<25x64xf32> to vector<4x4xf32>
    %73 = tpu.concatenate %69, %70, %71, %72 in 0 : vector<4x4xf32>, vector<4x4xf32>, vector<4x4xf32>, vector<4x4xf32> -> vector<16x4xf32>
    %74 = vector.extract_strided_slice %2 {offsets = [1, 16], sizes = [4, 4], strides = [1, 1]} : vector<25x64xf32> to vector<4x4xf32>
    %75 = vector.extract_strided_slice %2 {offsets = [6, 16], sizes = [4, 4], strides = [1, 1]} : vector<25x64xf32> to vector<4x4xf32>
    %76 = vector.extract_strided_slice %2 {offsets = [11, 16], sizes = [4, 4], strides = [1, 1]} : vector<25x64xf32> to vector<4x4xf32>
    %77 = vector.extract_strided_slice %2 {offsets = [16, 16], sizes = [4, 4], strides = [1, 1]} : vector<25x64xf32> to vector<4x4xf32>
    %78 = tpu.concatenate %74, %75, %76, %77 in 0 : vector<4x4xf32>, vector<4x4xf32>, vector<4x4xf32>, vector<4x4xf32> -> vector<16x4xf32>
    %79 = vector.extract_strided_slice %2 {offsets = [0, 40], sizes = [4, 4], strides = [1, 1]} : vector<25x64xf32> to vector<4x4xf32>
    %80 = vector.extract_strided_slice %2 {offsets = [5, 40], sizes = [4, 4], strides = [1, 1]} : vector<25x64xf32> to vector<4x4xf32>
    %81 = vector.extract_strided_slice %2 {offsets = [10, 40], sizes = [4, 4], strides = [1, 1]} : vector<25x64xf32> to vector<4x4xf32>
    %82 = vector.extract_strided_slice %2 {offsets = [15, 40], sizes = [4, 4], strides = [1, 1]} : vector<25x64xf32> to vector<4x4xf32>
    %83 = tpu.concatenate %79, %80, %81, %82 in 0 : vector<4x4xf32>, vector<4x4xf32>, vector<4x4xf32>, vector<4x4xf32> -> vector<16x4xf32>
    %84 = vector.extract_strided_slice %2 {offsets = [0, 44], sizes = [4, 4], strides = [1, 1]} : vector<25x64xf32> to vector<4x4xf32>
    %85 = vector.extract_strided_slice %2 {offsets = [5, 44], sizes = [4, 4], strides = [1, 1]} : vector<25x64xf32> to vector<4x4xf32>
    %86 = vector.extract_strided_slice %2 {offsets = [10, 44], sizes = [4, 4], strides = [1, 1]} : vector<25x64xf32> to vector<4x4xf32>
    %87 = vector.extract_strided_slice %2 {offsets = [15, 44], sizes = [4, 4], strides = [1, 1]} : vector<25x64xf32> to vector<4x4xf32>
    %88 = tpu.concatenate %84, %85, %86, %87 in 0 : vector<4x4xf32>, vector<4x4xf32>, vector<4x4xf32>, vector<4x4xf32> -> vector<16x4xf32>
    %89 = vector.extract_strided_slice %2 {offsets = [1, 32], sizes = [4, 4], strides = [1, 1]} : vector<25x64xf32> to vector<4x4xf32>
    %90 = vector.extract_strided_slice %2 {offsets = [6, 32], sizes = [4, 4], strides = [1, 1]} : vector<25x64xf32> to vector<4x4xf32>
    %91 = vector.extract_strided_slice %2 {offsets = [11, 32], sizes = [4, 4], strides = [1, 1]} : vector<25x64xf32> to vector<4x4xf32>
    %92 = vector.extract_strided_slice %2 {offsets = [16, 32], sizes = [4, 4], strides = [1, 1]} : vector<25x64xf32> to vector<4x4xf32>
    %93 = tpu.concatenate %89, %90, %91, %92 in 0 : vector<4x4xf32>, vector<4x4xf32>, vector<4x4xf32>, vector<4x4xf32> -> vector<16x4xf32>
    %94 = tpu.concatenate %53, %58, %63, %68, %73, %78, %83, %88, %93 in 1 : vector<16x4xf32>, vector<16x4xf32>, vector<16x4xf32>, vector<16x4xf32>, vector<16x4xf32>, vector<16x4xf32>, vector<16x4xf32>, vector<16x4xf32>, vector<16x4xf32> -> vector<16x36xf32>
    %95 = vector.extract_strided_slice %2 {offsets = [0, 32], sizes = [4, 4], strides = [1, 1]} : vector<25x64xf32> to vector<4x4xf32>
    %96 = vector.extract_strided_slice %2 {offsets = [5, 32], sizes = [4, 4], strides = [1, 1]} : vector<25x64xf32> to vector<4x4xf32>
    %97 = vector.extract_strided_slice %2 {offsets = [10, 32], sizes = [4, 4], strides = [1, 1]} : vector<25x64xf32> to vector<4x4xf32>
    %98 = vector.extract_strided_slice %2 {offsets = [15, 32], sizes = [4, 4], strides = [1, 1]} : vector<25x64xf32> to vector<4x4xf32>
    %99 = tpu.concatenate %95, %96, %97, %98 in 0 : vector<4x4xf32>, vector<4x4xf32>, vector<4x4xf32>, vector<4x4xf32> -> vector<16x4xf32>
    %100 = vector.extract_strided_slice %2 {offsets = [0, 36], sizes = [4, 4], strides = [1, 1]} : vector<25x64xf32> to vector<4x4xf32>
    %101 = vector.extract_strided_slice %2 {offsets = [5, 36], sizes = [4, 4], strides = [1, 1]} : vector<25x64xf32> to vector<4x4xf32>
    %102 = vector.extract_strided_slice %2 {offsets = [10, 36], sizes = [4, 4], strides = [1, 1]} : vector<25x64xf32> to vector<4x4xf32>
    %103 = vector.extract_strided_slice %2 {offsets = [15, 36], sizes = [4, 4], strides = [1, 1]} : vector<25x64xf32> to vector<4x4xf32>
    %104 = tpu.concatenate %100, %101, %102, %103 in 0 : vector<4x4xf32>, vector<4x4xf32>, vector<4x4xf32>, vector<4x4xf32> -> vector<16x4xf32>
    %105 = vector.extract_strided_slice %2 {offsets = [0, 40], sizes = [4, 4], strides = [1, 1]} : vector<25x64xf32> to vector<4x4xf32>
    %106 = vector.extract_strided_slice %2 {offsets = [5, 40], sizes = [4, 4], strides = [1, 1]} : vector<25x64xf32> to vector<4x4xf32>
    %107 = vector.extract_strided_slice %2 {offsets = [10, 40], sizes = [4, 4], strides = [1, 1]} : vector<25x64xf32> to vector<4x4xf32>
    %108 = vector.extract_strided_slice %2 {offsets = [15, 40], sizes = [4, 4], strides = [1, 1]} : vector<25x64xf32> to vector<4x4xf32>
    %109 = tpu.concatenate %105, %106, %107, %108 in 0 : vector<4x4xf32>, vector<4x4xf32>, vector<4x4xf32>, vector<4x4xf32> -> vector<16x4xf32>
    %110 = vector.extract_strided_slice %2 {offsets = [0, 48], sizes = [4, 4], strides = [1, 1]} : vector<25x64xf32> to vector<4x4xf32>
    %111 = vector.extract_strided_slice %2 {offsets = [5, 48], sizes = [4, 4], strides = [1, 1]} : vector<25x64xf32> to vector<4x4xf32>
    %112 = vector.extract_strided_slice %2 {offsets = [10, 48], sizes = [4, 4], strides = [1, 1]} : vector<25x64xf32> to vector<4x4xf32>
    %113 = vector.extract_strided_slice %2 {offsets = [15, 48], sizes = [4, 4], strides = [1, 1]} : vector<25x64xf32> to vector<4x4xf32>
    %114 = tpu.concatenate %110, %111, %112, %113 in 0 : vector<4x4xf32>, vector<4x4xf32>, vector<4x4xf32>, vector<4x4xf32> -> vector<16x4xf32>
    %115 = vector.extract_strided_slice %2 {offsets = [0, 52], sizes = [4, 4], strides = [1, 1]} : vector<25x64xf32> to vector<4x4xf32>
    %116 = vector.extract_strided_slice %2 {offsets = [5, 52], sizes = [4, 4], strides = [1, 1]} : vector<25x64xf32> to vector<4x4xf32>
    %117 = vector.extract_strided_slice %2 {offsets = [10, 52], sizes = [4, 4], strides = [1, 1]} : vector<25x64xf32> to vector<4x4xf32>
    %118 = vector.extract_strided_slice %2 {offsets = [15, 52], sizes = [4, 4], strides = [1, 1]} : vector<25x64xf32> to vector<4x4xf32>
    %119 = tpu.concatenate %115, %116, %117, %118 in 0 : vector<4x4xf32>, vector<4x4xf32>, vector<4x4xf32>, vector<4x4xf32> -> vector<16x4xf32>
    %120 = vector.extract_strided_slice %2 {offsets = [0, 56], sizes = [4, 4], strides = [1, 1]} : vector<25x64xf32> to vector<4x4xf32>
    %121 = vector.extract_strided_slice %2 {offsets = [5, 56], sizes = [4, 4], strides = [1, 1]} : vector<25x64xf32> to vector<4x4xf32>
    %122 = vector.extract_strided_slice %2 {offsets = [10, 56], sizes = [4, 4], strides = [1, 1]} : vector<25x64xf32> to vector<4x4xf32>
    %123 = vector.extract_strided_slice %2 {offsets = [15, 56], sizes = [4, 4], strides = [1, 1]} : vector<25x64xf32> to vector<4x4xf32>
    %124 = tpu.concatenate %120, %121, %122, %123 in 0 : vector<4x4xf32>, vector<4x4xf32>, vector<4x4xf32>, vector<4x4xf32> -> vector<16x4xf32>
    %125 = vector.extract_strided_slice %2 {offsets = [5, 0], sizes = [4, 4], strides = [1, 1]} : vector<25x64xf32> to vector<4x4xf32>
    %126 = vector.extract_strided_slice %2 {offsets = [10, 0], sizes = [4, 4], strides = [1, 1]} : vector<25x64xf32> to vector<4x4xf32>
    %127 = vector.extract_strided_slice %2 {offsets = [15, 0], sizes = [4, 4], strides = [1, 1]} : vector<25x64xf32> to vector<4x4xf32>
    %128 = vector.extract_strided_slice %2 {offsets = [20, 0], sizes = [4, 4], strides = [1, 1]} : vector<25x64xf32> to vector<4x4xf32>
    %129 = tpu.concatenate %125, %126, %127, %128 in 0 : vector<4x4xf32>, vector<4x4xf32>, vector<4x4xf32>, vector<4x4xf32> -> vector<16x4xf32>
    %130 = vector.extract_strided_slice %2 {offsets = [5, 4], sizes = [4, 4], strides = [1, 1]} : vector<25x64xf32> to vector<4x4xf32>
    %131 = vector.extract_strided_slice %2 {offsets = [10, 4], sizes = [4, 4], strides = [1, 1]} : vector<25x64xf32> to vector<4x4xf32>
    %132 = vector.extract_strided_slice %2 {offsets = [15, 4], sizes = [4, 4], strides = [1, 1]} : vector<25x64xf32> to vector<4x4xf32>
    %133 = vector.extract_strided_slice %2 {offsets = [20, 4], sizes = [4, 4], strides = [1, 1]} : vector<25x64xf32> to vector<4x4xf32>
    %134 = tpu.concatenate %130, %131, %132, %133 in 0 : vector<4x4xf32>, vector<4x4xf32>, vector<4x4xf32>, vector<4x4xf32> -> vector<16x4xf32>
    %135 = vector.extract_strided_slice %2 {offsets = [5, 8], sizes = [4, 4], strides = [1, 1]} : vector<25x64xf32> to vector<4x4xf32>
    %136 = vector.extract_strided_slice %2 {offsets = [10, 8], sizes = [4, 4], strides = [1, 1]} : vector<25x64xf32> to vector<4x4xf32>
    %137 = vector.extract_strided_slice %2 {offsets = [15, 8], sizes = [4, 4], strides = [1, 1]} : vector<25x64xf32> to vector<4x4xf32>
    %138 = vector.extract_strided_slice %2 {offsets = [20, 8], sizes = [4, 4], strides = [1, 1]} : vector<25x64xf32> to vector<4x4xf32>
    %139 = tpu.concatenate %135, %136, %137, %138 in 0 : vector<4x4xf32>, vector<4x4xf32>, vector<4x4xf32>, vector<4x4xf32> -> vector<16x4xf32>
    %140 = tpu.concatenate %99, %104, %109, %114, %119, %124, %129, %134, %139 in 1 : vector<16x4xf32>, vector<16x4xf32>, vector<16x4xf32>, vector<16x4xf32>, vector<16x4xf32>, vector<16x4xf32>, vector<16x4xf32>, vector<16x4xf32>, vector<16x4xf32> -> vector<16x36xf32>
    %141 = vector.extract_strided_slice %2 {offsets = [0, 40], sizes = [4, 4], strides = [1, 1]} : vector<25x64xf32> to vector<4x4xf32>
    %142 = vector.extract_strided_slice %2 {offsets = [5, 40], sizes = [4, 4], strides = [1, 1]} : vector<25x64xf32> to vector<4x4xf32>
    %143 = vector.extract_strided_slice %2 {offsets = [10, 40], sizes = [4, 4], strides = [1, 1]} : vector<25x64xf32> to vector<4x4xf32>
    %144 = vector.extract_strided_slice %2 {offsets = [15, 40], sizes = [4, 4], strides = [1, 1]} : vector<25x64xf32> to vector<4x4xf32>
    %145 = tpu.concatenate %141, %142, %143, %144 in 0 : vector<4x4xf32>, vector<4x4xf32>, vector<4x4xf32>, vector<4x4xf32> -> vector<16x4xf32>
    %146 = vector.extract_strided_slice %2 {offsets = [0, 44], sizes = [4, 4], strides = [1, 1]} : vector<25x64xf32> to vector<4x4xf32>
    %147 = vector.extract_strided_slice %2 {offsets = [5, 44], sizes = [4, 4], strides = [1, 1]} : vector<25x64xf32> to vector<4x4xf32>
    %148 = vector.extract_strided_slice %2 {offsets = [10, 44], sizes = [4, 4], strides = [1, 1]} : vector<25x64xf32> to vector<4x4xf32>
    %149 = vector.extract_strided_slice %2 {offsets = [15, 44], sizes = [4, 4], strides = [1, 1]} : vector<25x64xf32> to vector<4x4xf32>
    %150 = tpu.concatenate %146, %147, %148, %149 in 0 : vector<4x4xf32>, vector<4x4xf32>, vector<4x4xf32>, vector<4x4xf32> -> vector<16x4xf32>
    %151 = vector.extract_strided_slice %2 {offsets = [1, 32], sizes = [4, 4], strides = [1, 1]} : vector<25x64xf32> to vector<4x4xf32>
    %152 = vector.extract_strided_slice %2 {offsets = [6, 32], sizes = [4, 4], strides = [1, 1]} : vector<25x64xf32> to vector<4x4xf32>
    %153 = vector.extract_strided_slice %2 {offsets = [11, 32], sizes = [4, 4], strides = [1, 1]} : vector<25x64xf32> to vector<4x4xf32>
    %154 = vector.extract_strided_slice %2 {offsets = [16, 32], sizes = [4, 4], strides = [1, 1]} : vector<25x64xf32> to vector<4x4xf32>
    %155 = tpu.concatenate %151, %152, %153, %154 in 0 : vector<4x4xf32>, vector<4x4xf32>, vector<4x4xf32>, vector<4x4xf32> -> vector<16x4xf32>
    %156 = vector.extract_strided_slice %2 {offsets = [0, 56], sizes = [4, 4], strides = [1, 1]} : vector<25x64xf32> to vector<4x4xf32>
    %157 = vector.extract_strided_slice %2 {offsets = [5, 56], sizes = [4, 4], strides = [1, 1]} : vector<25x64xf32> to vector<4x4xf32>
    %158 = vector.extract_strided_slice %2 {offsets = [10, 56], sizes = [4, 4], strides = [1, 1]} : vector<25x64xf32> to vector<4x4xf32>
    %159 = vector.extract_strided_slice %2 {offsets = [15, 56], sizes = [4, 4], strides = [1, 1]} : vector<25x64xf32> to vector<4x4xf32>
    %160 = tpu.concatenate %156, %157, %158, %159 in 0 : vector<4x4xf32>, vector<4x4xf32>, vector<4x4xf32>, vector<4x4xf32> -> vector<16x4xf32>
    %161 = vector.extract_strided_slice %2 {offsets = [0, 60], sizes = [4, 4], strides = [1, 1]} : vector<25x64xf32> to vector<4x4xf32>
    %162 = vector.extract_strided_slice %2 {offsets = [5, 60], sizes = [4, 4], strides = [1, 1]} : vector<25x64xf32> to vector<4x4xf32>
    %163 = vector.extract_strided_slice %2 {offsets = [10, 60], sizes = [4, 4], strides = [1, 1]} : vector<25x64xf32> to vector<4x4xf32>
    %164 = vector.extract_strided_slice %2 {offsets = [15, 60], sizes = [4, 4], strides = [1, 1]} : vector<25x64xf32> to vector<4x4xf32>
    %165 = tpu.concatenate %161, %162, %163, %164 in 0 : vector<4x4xf32>, vector<4x4xf32>, vector<4x4xf32>, vector<4x4xf32> -> vector<16x4xf32>
    %166 = vector.extract_strided_slice %2 {offsets = [1, 48], sizes = [4, 4], strides = [1, 1]} : vector<25x64xf32> to vector<4x4xf32>
    %167 = vector.extract_strided_slice %2 {offsets = [6, 48], sizes = [4, 4], strides = [1, 1]} : vector<25x64xf32> to vector<4x4xf32>
    %168 = vector.extract_strided_slice %2 {offsets = [11, 48], sizes = [4, 4], strides = [1, 1]} : vector<25x64xf32> to vector<4x4xf32>
    %169 = vector.extract_strided_slice %2 {offsets = [16, 48], sizes = [4, 4], strides = [1, 1]} : vector<25x64xf32> to vector<4x4xf32>
    %170 = tpu.concatenate %166, %167, %168, %169 in 0 : vector<4x4xf32>, vector<4x4xf32>, vector<4x4xf32>, vector<4x4xf32> -> vector<16x4xf32>
    %171 = vector.extract_strided_slice %2 {offsets = [5, 8], sizes = [4, 4], strides = [1, 1]} : vector<25x64xf32> to vector<4x4xf32>
    %172 = vector.extract_strided_slice %2 {offsets = [10, 8], sizes = [4, 4], strides = [1, 1]} : vector<25x64xf32> to vector<4x4xf32>
    %173 = vector.extract_strided_slice %2 {offsets = [15, 8], sizes = [4, 4], strides = [1, 1]} : vector<25x64xf32> to vector<4x4xf32>
    %174 = vector.extract_strided_slice %2 {offsets = [20, 8], sizes = [4, 4], strides = [1, 1]} : vector<25x64xf32> to vector<4x4xf32>
    %175 = tpu.concatenate %171, %172, %173, %174 in 0 : vector<4x4xf32>, vector<4x4xf32>, vector<4x4xf32>, vector<4x4xf32> -> vector<16x4xf32>
    %176 = vector.extract_strided_slice %2 {offsets = [5, 12], sizes = [4, 4], strides = [1, 1]} : vector<25x64xf32> to vector<4x4xf32>
    %177 = vector.extract_strided_slice %2 {offsets = [10, 12], sizes = [4, 4], strides = [1, 1]} : vector<25x64xf32> to vector<4x4xf32>
    %178 = vector.extract_strided_slice %2 {offsets = [15, 12], sizes = [4, 4], strides = [1, 1]} : vector<25x64xf32> to vector<4x4xf32>
    %179 = vector.extract_strided_slice %2 {offsets = [20, 12], sizes = [4, 4], strides = [1, 1]} : vector<25x64xf32> to vector<4x4xf32>
    %180 = tpu.concatenate %176, %177, %178, %179 in 0 : vector<4x4xf32>, vector<4x4xf32>, vector<4x4xf32>, vector<4x4xf32> -> vector<16x4xf32>
    %181 = vector.extract_strided_slice %2 {offsets = [6, 0], sizes = [4, 4], strides = [1, 1]} : vector<25x64xf32> to vector<4x4xf32>
    %182 = vector.extract_strided_slice %2 {offsets = [11, 0], sizes = [4, 4], strides = [1, 1]} : vector<25x64xf32> to vector<4x4xf32>
    %183 = vector.extract_strided_slice %2 {offsets = [16, 0], sizes = [4, 4], strides = [1, 1]} : vector<25x64xf32> to vector<4x4xf32>
    %184 = vector.extract_strided_slice %2 {offsets = [21, 0], sizes = [4, 4], strides = [1, 1]} : vector<25x64xf32> to vector<4x4xf32>
    %185 = tpu.concatenate %181, %182, %183, %184 in 0 : vector<4x4xf32>, vector<4x4xf32>, vector<4x4xf32>, vector<4x4xf32> -> vector<16x4xf32>
    %186 = tpu.concatenate %145, %150, %155, %160, %165, %170, %175, %180, %185 in 1 : vector<16x4xf32>, vector<16x4xf32>, vector<16x4xf32>, vector<16x4xf32>, vector<16x4xf32>, vector<16x4xf32>, vector<16x4xf32>, vector<16x4xf32>, vector<16x4xf32> -> vector<16x36xf32>
    %187 = tpu.concatenate %48, %94, %140, %186 in 0 : vector<16x36xf32>, vector<16x36xf32>, vector<16x36xf32>, vector<16x36xf32> -> vector<64x36xf32>
    %c0_2 = arith.constant 0 : index
    %c0_3 = arith.constant 0 : index
    %188 = vector.load %arg3[%c0_2, %c0_3] : memref<3x32xf32, #tpu.memory_space<vmem>>, vector<1x32xf32>
    %c1 = arith.constant 1 : index
    %c0_4 = arith.constant 0 : index
    %189 = vector.load %arg3[%c1, %c0_4] : memref<3x32xf32, #tpu.memory_space<vmem>>, vector<1x32xf32>
    %c2 = arith.constant 2 : index
    %c0_5 = arith.constant 0 : index
    %190 = vector.load %arg3[%c2, %c0_5] : memref<3x32xf32, #tpu.memory_space<vmem>>, vector<1x32xf32>
    %191 = arith.truncf %187 : vector<64x36xf32> to vector<64x36xbf16>
    %c0_6 = arith.constant 0 : index
    %c0_7 = arith.constant 0 : index
    %192 = vector.load %arg2[%c0_6, %c0_7] : memref<36x32xbf16, #tpu.memory_space<vmem>>, vector<36x32xbf16>
    %cst = arith.constant dense<0.000000e+00> : vector<64x32xf32>
    %193 = tpu.matmul %191, %192, %cst {dimension_numbers = #tpu.dot_dimension_numbers<[1], [0], [0], [1], [0, 0, 1, 1], [], []>} : vector<64x36xbf16>, vector<36x32xbf16>, vector<64x32xf32> -> vector<64x32xf32>
    %194 = vector.broadcast %188 : vector<1x32xf32> to vector<64x32xf32>
    %195 = arith.addf %193, %194 : vector<64x32xf32>
    %cst_8 = arith.constant 0.000000e+00 : f32
    %196 = vector.broadcast %cst_8 : f32 to vector<64x32xf32>
    %197 = arith.maximumf %195, %196 : vector<64x32xf32>
    %198 = vector.broadcast %189 : vector<1x32xf32> to vector<64x32xf32>
    %199 = arith.mulf %197, %198 : vector<64x32xf32>
    %200 = vector.broadcast %190 : vector<1x32xf32> to vector<64x32xf32>
    %201 = arith.addf %199, %200 : vector<64x32xf32>
    %202 = vector.extract_strided_slice %201 {offsets = [0, 0], sizes = [16, 32], strides = [1, 1]} : vector<64x32xf32> to vector<16x32xf32>
    %203 = vector.extract_strided_slice %201 {offsets = [16, 0], sizes = [16, 32], strides = [1, 1]} : vector<64x32xf32> to vector<16x32xf32>
    %204 = vector.extract_strided_slice %201 {offsets = [32, 0], sizes = [16, 32], strides = [1, 1]} : vector<64x32xf32> to vector<16x32xf32>
    %205 = vector.extract_strided_slice %201 {offsets = [48, 0], sizes = [16, 32], strides = [1, 1]} : vector<64x32xf32> to vector<16x32xf32>
    %cst_9 = arith.constant 0.000000e+00 : f32
    %206 = vector.broadcast %cst_9 : f32 to vector<1x32xf32>
    %cst_10 = arith.constant 0.000000e+00 : f32
    %207 = vector.broadcast %cst_10 : f32 to vector<4x32xf32>
    %208 = vector.extract_strided_slice %205 {offsets = [0, 0], sizes = [3, 32], strides = [1, 1]} : vector<16x32xf32> to vector<3x32xf32>
    %209 = tpu.concatenate %206, %208 in 0 : vector<1x32xf32>, vector<3x32xf32> -> vector<4x32xf32>
    %210 = vector.extract_strided_slice %205 {offsets = [4, 0], sizes = [3, 32], strides = [1, 1]} : vector<16x32xf32> to vector<3x32xf32>
    %211 = tpu.concatenate %206, %210 in 0 : vector<1x32xf32>, vector<3x32xf32> -> vector<4x32xf32>
    %212 = vector.extract_strided_slice %205 {offsets = [8, 0], sizes = [3, 32], strides = [1, 1]} : vector<16x32xf32> to vector<3x32xf32>
    %213 = tpu.concatenate %206, %212 in 0 : vector<1x32xf32>, vector<3x32xf32> -> vector<4x32xf32>
    %214 = tpu.concatenate %207, %209, %211, %213 in 0 : vector<4x32xf32>, vector<4x32xf32>, vector<4x32xf32>, vector<4x32xf32> -> vector<16x32xf32>
    %215 = vector.extract_strided_slice %204 {offsets = [0, 0], sizes = [4, 32], strides = [1, 1]} : vector<16x32xf32> to vector<4x32xf32>
    %216 = vector.extract_strided_slice %204 {offsets = [4, 0], sizes = [4, 32], strides = [1, 1]} : vector<16x32xf32> to vector<4x32xf32>
    %217 = vector.extract_strided_slice %204 {offsets = [8, 0], sizes = [4, 32], strides = [1, 1]} : vector<16x32xf32> to vector<4x32xf32>
    %218 = tpu.concatenate %207, %215, %216, %217 in 0 : vector<4x32xf32>, vector<4x32xf32>, vector<4x32xf32>, vector<4x32xf32> -> vector<16x32xf32>
    %219 = vector.extract_strided_slice %205 {offsets = [0, 0], sizes = [4, 32], strides = [1, 1]} : vector<16x32xf32> to vector<4x32xf32>
    %220 = vector.extract_strided_slice %205 {offsets = [4, 0], sizes = [4, 32], strides = [1, 1]} : vector<16x32xf32> to vector<4x32xf32>
    %221 = vector.extract_strided_slice %205 {offsets = [8, 0], sizes = [4, 32], strides = [1, 1]} : vector<16x32xf32> to vector<4x32xf32>
    %222 = tpu.concatenate %207, %219, %220, %221 in 0 : vector<4x32xf32>, vector<4x32xf32>, vector<4x32xf32>, vector<4x32xf32> -> vector<16x32xf32>
    %223 = vector.extract_strided_slice %203 {offsets = [0, 0], sizes = [3, 32], strides = [1, 1]} : vector<16x32xf32> to vector<3x32xf32>
    %224 = tpu.concatenate %206, %223 in 0 : vector<1x32xf32>, vector<3x32xf32> -> vector<4x32xf32>
    %225 = vector.extract_strided_slice %203 {offsets = [4, 0], sizes = [3, 32], strides = [1, 1]} : vector<16x32xf32> to vector<3x32xf32>
    %226 = tpu.concatenate %206, %225 in 0 : vector<1x32xf32>, vector<3x32xf32> -> vector<4x32xf32>
    %227 = vector.extract_strided_slice %203 {offsets = [8, 0], sizes = [3, 32], strides = [1, 1]} : vector<16x32xf32> to vector<3x32xf32>
    %228 = tpu.concatenate %206, %227 in 0 : vector<1x32xf32>, vector<3x32xf32> -> vector<4x32xf32>
    %229 = vector.extract_strided_slice %203 {offsets = [12, 0], sizes = [3, 32], strides = [1, 1]} : vector<16x32xf32> to vector<3x32xf32>
    %230 = tpu.concatenate %206, %229 in 0 : vector<1x32xf32>, vector<3x32xf32> -> vector<4x32xf32>
    %231 = tpu.concatenate %224, %226, %228, %230 in 0 : vector<4x32xf32>, vector<4x32xf32>, vector<4x32xf32>, vector<4x32xf32> -> vector<16x32xf32>
    %232 = vector.extract_strided_slice %202 {offsets = [0, 0], sizes = [4, 32], strides = [1, 1]} : vector<16x32xf32> to vector<4x32xf32>
    %233 = vector.extract_strided_slice %202 {offsets = [4, 0], sizes = [4, 32], strides = [1, 1]} : vector<16x32xf32> to vector<4x32xf32>
    %234 = vector.extract_strided_slice %202 {offsets = [8, 0], sizes = [4, 32], strides = [1, 1]} : vector<16x32xf32> to vector<4x32xf32>
    %235 = vector.extract_strided_slice %202 {offsets = [12, 0], sizes = [4, 32], strides = [1, 1]} : vector<16x32xf32> to vector<4x32xf32>
    %236 = tpu.concatenate %232, %233, %234, %235 in 0 : vector<4x32xf32>, vector<4x32xf32>, vector<4x32xf32>, vector<4x32xf32> -> vector<16x32xf32>
    %237 = vector.extract_strided_slice %203 {offsets = [0, 0], sizes = [4, 32], strides = [1, 1]} : vector<16x32xf32> to vector<4x32xf32>
    %238 = vector.extract_strided_slice %203 {offsets = [4, 0], sizes = [4, 32], strides = [1, 1]} : vector<16x32xf32> to vector<4x32xf32>
    %239 = vector.extract_strided_slice %203 {offsets = [8, 0], sizes = [4, 32], strides = [1, 1]} : vector<16x32xf32> to vector<4x32xf32>
    %240 = vector.extract_strided_slice %203 {offsets = [12, 0], sizes = [4, 32], strides = [1, 1]} : vector<16x32xf32> to vector<4x32xf32>
    %241 = tpu.concatenate %237, %238, %239, %240 in 0 : vector<4x32xf32>, vector<4x32xf32>, vector<4x32xf32>, vector<4x32xf32> -> vector<16x32xf32>
    %242 = vector.extract_strided_slice %205 {offsets = [0, 0], sizes = [3, 32], strides = [1, 1]} : vector<16x32xf32> to vector<3x32xf32>
    %243 = tpu.concatenate %206, %242 in 0 : vector<1x32xf32>, vector<3x32xf32> -> vector<4x32xf32>
    %244 = vector.extract_strided_slice %205 {offsets = [4, 0], sizes = [3, 32], strides = [1, 1]} : vector<16x32xf32> to vector<3x32xf32>
    %245 = tpu.concatenate %206, %244 in 0 : vector<1x32xf32>, vector<3x32xf32> -> vector<4x32xf32>
    %246 = vector.extract_strided_slice %205 {offsets = [8, 0], sizes = [3, 32], strides = [1, 1]} : vector<16x32xf32> to vector<3x32xf32>
    %247 = tpu.concatenate %206, %246 in 0 : vector<1x32xf32>, vector<3x32xf32> -> vector<4x32xf32>
    %248 = vector.extract_strided_slice %205 {offsets = [12, 0], sizes = [3, 32], strides = [1, 1]} : vector<16x32xf32> to vector<3x32xf32>
    %249 = tpu.concatenate %206, %248 in 0 : vector<1x32xf32>, vector<3x32xf32> -> vector<4x32xf32>
    %250 = tpu.concatenate %243, %245, %247, %249 in 0 : vector<4x32xf32>, vector<4x32xf32>, vector<4x32xf32>, vector<4x32xf32> -> vector<16x32xf32>
    %251 = vector.extract_strided_slice %204 {offsets = [0, 0], sizes = [4, 32], strides = [1, 1]} : vector<16x32xf32> to vector<4x32xf32>
    %252 = vector.extract_strided_slice %204 {offsets = [4, 0], sizes = [4, 32], strides = [1, 1]} : vector<16x32xf32> to vector<4x32xf32>
    %253 = vector.extract_strided_slice %204 {offsets = [8, 0], sizes = [4, 32], strides = [1, 1]} : vector<16x32xf32> to vector<4x32xf32>
    %254 = vector.extract_strided_slice %204 {offsets = [12, 0], sizes = [4, 32], strides = [1, 1]} : vector<16x32xf32> to vector<4x32xf32>
    %255 = tpu.concatenate %251, %252, %253, %254 in 0 : vector<4x32xf32>, vector<4x32xf32>, vector<4x32xf32>, vector<4x32xf32> -> vector<16x32xf32>
    %256 = vector.extract_strided_slice %205 {offsets = [0, 0], sizes = [4, 32], strides = [1, 1]} : vector<16x32xf32> to vector<4x32xf32>
    %257 = vector.extract_strided_slice %205 {offsets = [4, 0], sizes = [4, 32], strides = [1, 1]} : vector<16x32xf32> to vector<4x32xf32>
    %258 = vector.extract_strided_slice %205 {offsets = [8, 0], sizes = [4, 32], strides = [1, 1]} : vector<16x32xf32> to vector<4x32xf32>
    %259 = vector.extract_strided_slice %205 {offsets = [12, 0], sizes = [4, 32], strides = [1, 1]} : vector<16x32xf32> to vector<4x32xf32>
    %260 = tpu.concatenate %256, %257, %258, %259 in 0 : vector<4x32xf32>, vector<4x32xf32>, vector<4x32xf32>, vector<4x32xf32> -> vector<16x32xf32>
    %261 = tpu.concatenate %214, %218, %222, %231, %236, %241, %250, %255, %260 in 1 : vector<16x32xf32>, vector<16x32xf32>, vector<16x32xf32>, vector<16x32xf32>, vector<16x32xf32>, vector<16x32xf32>, vector<16x32xf32>, vector<16x32xf32>, vector<16x32xf32> -> vector<16x288xf32>
    %c0_11 = arith.constant 0 : index
    %c0_12 = arith.constant 0 : index
    %262 = vector.load %arg5[%c0_11, %c0_12] : memref<3x64xf32, #tpu.memory_space<vmem>>, vector<1x64xf32>
    %c1_13 = arith.constant 1 : index
    %c0_14 = arith.constant 0 : index
    %263 = vector.load %arg5[%c1_13, %c0_14] : memref<3x64xf32, #tpu.memory_space<vmem>>, vector<1x64xf32>
    %c2_15 = arith.constant 2 : index
    %c0_16 = arith.constant 0 : index
    %264 = vector.load %arg5[%c2_15, %c0_16] : memref<3x64xf32, #tpu.memory_space<vmem>>, vector<1x64xf32>
    %265 = arith.truncf %261 : vector<16x288xf32> to vector<16x288xbf16>
    %c0_17 = arith.constant 0 : index
    %c0_18 = arith.constant 0 : index
    %266 = vector.load %arg4[%c0_17, %c0_18] : memref<288x64xbf16, #tpu.memory_space<vmem>>, vector<288x64xbf16>
    %cst_19 = arith.constant dense<0.000000e+00> : vector<16x64xf32>
    %267 = tpu.matmul %265, %266, %cst_19 {dimension_numbers = #tpu.dot_dimension_numbers<[1], [0], [0], [1], [0, 0, 1, 1], [], []>} : vector<16x288xbf16>, vector<288x64xbf16>, vector<16x64xf32> -> vector<16x64xf32>
    %268 = vector.broadcast %262 : vector<1x64xf32> to vector<16x64xf32>
    %269 = arith.addf %267, %268 : vector<16x64xf32>
    %cst_20 = arith.constant 0.000000e+00 : f32
    %270 = vector.broadcast %cst_20 : f32 to vector<16x64xf32>
    %271 = arith.maximumf %269, %270 : vector<16x64xf32>
    %272 = vector.broadcast %263 : vector<1x64xf32> to vector<16x64xf32>
    %273 = arith.mulf %271, %272 : vector<16x64xf32>
    %274 = vector.broadcast %264 : vector<1x64xf32> to vector<16x64xf32>
    %275 = arith.addf %273, %274 : vector<16x64xf32>
    %276 = vector.extract_strided_slice %275 {offsets = [0, 0], sizes = [4, 64], strides = [1, 1]} : vector<16x64xf32> to vector<4x64xf32>
    %277 = vector.extract_strided_slice %275 {offsets = [4, 0], sizes = [4, 64], strides = [1, 1]} : vector<16x64xf32> to vector<4x64xf32>
    %278 = vector.extract_strided_slice %275 {offsets = [8, 0], sizes = [4, 64], strides = [1, 1]} : vector<16x64xf32> to vector<4x64xf32>
    %279 = vector.extract_strided_slice %275 {offsets = [12, 0], sizes = [4, 64], strides = [1, 1]} : vector<16x64xf32> to vector<4x64xf32>
    %280 = tpu.concatenate %276, %277, %278, %279 in 1 : vector<4x64xf32>, vector<4x64xf32>, vector<4x64xf32>, vector<4x64xf32> -> vector<4x256xf32>
    %c0_21 = arith.constant 0 : index
    %c0_22 = arith.constant 0 : index
    %c0_23 = arith.constant 0 : index
    %281 = vector.load %arg6[%c0_21, %c0_22, %c0_23] : memref<1x4x256xf32, #tpu.memory_space<vmem>>, vector<1x4x256xf32>
    %282 = vector.shape_cast %281 : vector<1x4x256xf32> to vector<4x256xf32>
    %283 = vector.shape_cast %280 : vector<4x256xf32> to vector<1x4x256xf32>
    tpu.vector_store %arg6[%c0_21, %c0_22, %c0_23], %283 {strides = array<i32>} : memref<1x4x256xf32, #tpu.memory_space<vmem>>, vector<1x4x256xf32>,
    return
  }
  func.func @transform_0(%arg0: i32) -> (i32, i32, i32) {
    %c0_i32 = arith.constant 0 : i32
    %c0_i32_0 = arith.constant 0 : i32
    %c0_i32_1 = arith.constant 0 : i32
    return %arg0, %c0_i32, %c0_i32_0 : i32, i32, i32
  }
  func.func @transform_1(%arg0: i32) -> (i32, i32) {
    %c0_i32 = arith.constant 0 : i32
    %c0_i32_0 = arith.constant 0 : i32
    %c0_i32_1 = arith.constant 0 : i32
    return %c0_i32, %c0_i32_0 : i32, i32
  }
  func.func @transform_2(%arg0: i32) -> (i32, i32) {
    %c0_i32 = arith.constant 0 : i32
    %c0_i32_0 = arith.constant 0 : i32
    %c0_i32_1 = arith.constant 0 : i32
    return %c0_i32, %c0_i32_0 : i32, i32
  }
  func.func @transform_3(%arg0: i32) -> (i32, i32) {
    %c0_i32 = arith.constant 0 : i32
    %c0_i32_0 = arith.constant 0 : i32
    %c0_i32_1 = arith.constant 0 : i32
    return %c0_i32, %c0_i32_0 : i32, i32
  }
  func.func @transform_4(%arg0: i32) -> (i32, i32) {
    %c0_i32 = arith.constant 0 : i32
    %c0_i32_0 = arith.constant 0 : i32
    %c0_i32_1 = arith.constant 0 : i32
    return %c0_i32, %c0_i32_0 : i32, i32
  }
  func.func @transform_5(%arg0: i32) -> (i32, i32, i32) {
    %c0_i32 = arith.constant 0 : i32
    %c0_i32_0 = arith.constant 0 : i32
    %c0_i32_1 = arith.constant 0 : i32
    return %arg0, %c0_i32, %c0_i32_0 : i32, i32, i32
  }
}

</mosaic_0001>

<bundles_post_ra>
// kernel: tpu_custom_call.1
= control target key start
LH: loop header
LB: loop body
LE: loop exit
PB: predicated region body
PF: predicated region fallthrough
CT: control target
= control target key end

     0   :  { %10 = vsyncpa [#allocation3], 0  ;;  %s1837_s0 = inlined_call_operand.vmem [shape: bf16[2,25,64], index: 0, kind: input, shape index: {}]   ;;  %s1838_s1 = inlined_call_operand.vmem [shape: bf16[36,32], index: 1, kind: input, shape index: {}]   ;;  %s1839_s2 = inlined_call_operand.vmem [shape: f32[3,32], index: 2, kind: input, shape index: {}]   ;;  %s1840_s3 = inlined_call_operand.vmem [shape: bf16[288,64], index: 3, kind: input, shape index: {}]   ;;  %s1841_s4 = inlined_call_operand.vmem [shape: f32[3,64], index: 4, kind: input, shape index: {}]   ;;  %s1842_s5 = inlined_call_operand.hbm [shape: f32[2,4,256], index: 5, kind: output, shape index: {}]  }
   0x1   :  { %12 = vsyncpa [#allocation3 + $0x1], 0  ;;  %s1460_s18 = smov 0   ;;  %s1462_s19 = smov 0  }
   0x2   :  { %s1464_s20 = smov 0   ;;  %s1466_s21 = smov 0  }
   0x3 LB: > { %s1481_s22 = sadd.s32 4294967295, %s1409_s21   ;;  %s1059_s23 = sadd.s32 4294967294, %s1409_s21   ;;  %s1409_s21 = sphi %s1466_s21, %s1848_s21   ;;  %s1405_s20 = sphi %s1464_s20, %s1847_s20   ;;  %s1401_s19 = sphi %s1462_s19, %s1846_s19   ;;  %s1397_s18 = sphi %s1460_s18, %s1845_s18  }
   0x4   : > { %s1485_s24 = sadd.s32 1, %s1409_s21   ;;  %s135_s25 = sadd.s32 1, %s1405_s20 }
   0x5   : > { %s132_s26 = ssub.s32 %s1409_s21, %s1485_s24  ;;  %p145_p0 = scmp.ne.s32.totalorder %s1405_s20, %s1401_s19 }
   0x6   : > { %p133_p1 = scmp.eq.s32.totalorder %s132_s26, 0  ;;  %p146_p2 = scmp.eq.s32.totalorder %s1481_s22, 1 }
   0x7   : > { %p151_p3 = scmp.ne.s32.totalorder %s1401_s19, %s1397_s18  ;;  %p152_p4 = scmp.eq.s32.totalorder %s1059_s23, 1 }
   0x8   : > { %s1496_s27 = scalar_select %p133_p1, %s1405_s20, %s135_s25  }
   0x9   : > { %p1498_p5 = por %p146_p2, %p145_p0  ;;  %p1502_p6 = por %p152_p4, %p151_p3 }
   0xa   : > { %p1062_p7 = scmp.ge.s32.totalorder %s1409_s21, 1  ;;  %p190_p8 = scmp.lt.s32.totalorder %s1409_s21, 3 }
   0xc   : > { %p191_p9 = pnand %p1062_p7, %p190_p8 }
   0xd   : > { %p218_p10 = scmp.lt.s32.totalorder (!%p191_p9), %s1481_s22, 1  ;;  %vm234_vm0 = vcmask (!%p191_p9), 1046528   ;;  %v1326_v2 = vld [vmem:[%s1838_s1] sm:$0xff] (!%p191_p9)   ;;  %vm242_vm1 = vcmask (!%p191_p9), 1044480   ;;  %vm247_vm2 = vcmask (!%p191_p9), 1043456   ;;  %vm286_vm3 = vcmask (!%p191_p9), 1045504  }
   0xe   : > { %194 = sbr.rel (%p191_p9) target bundleno = 900 (0x384), region = 40  ;;  %1141 = vmatprep.subr.bf16.mxu0 (!%p191_p9), %v1326_v2  ;;  %v1327_v14 = vld [vmem:[%s1838_s1 + $0x8] sm:$0xff] (!%p191_p9)   ;;  %v1328_v23 = vld [vmem:[%s1838_s1 + $0x10] ss:$0 sps:$4 sm:$0x33] (!%p191_p9)   ;;  %s1411_s16 = smov (!%p191_p9), 8  }
   0xf   : > { %1142 = vmatpush3.bf16.msra.mxu0 (!%p191_p9), %v1326_v2  ;;  %s1412_s17 = smov (!%p191_p9), 124   ;;  %vm383_vm4 = vcmask (!%p191_p9), 1041408   ;;  %vm335_vm5 = vcmask (!%p191_p9), 1042432   ;;  %vm342_vm6 = vcmask (!%p191_p9), 1040384   ;;  %s1413_s23 = smov (!%p191_p9), 116   ;;  %vm267_vm7 = vcmask (!%p191_p9), 97280  }
  0x10   : > { %1143 = vmatprep.subr.bf16.mxu0 (!%p191_p9), %v1327_v14  ;;  %s1414_s25 = smov (!%p191_p9), 120   ;;  %v492_v28 = vsel (!%p191_p9), %vm383_vm4, %v1328_v23, 0  ;;  %s1415_s26 = smov (!%p191_p9), 112   ;;  %vm270_vm8 = vcmask (!%p191_p9), 130048   ;;  %vm273_vm9 = vcmask (!%p191_p9), 162816   ;;  %vm264_vm10 = vcmask (!%p191_p9), 64512  }
  0x11   : > { %s1418_s7 = smov (!%p191_p9), 96   ;;  %s1419_s8 = smov (!%p191_p9), 104   ;;  %vm276_vm11 = vcmask (!%p191_p9), 195584   ;;  %vm279_vm12 = vcmask (!%p191_p9), 228352   ;;  %vm282_vm13 = vcmask (!%p191_p9), 261120   ;;  %vm478_vm14 = vcmask (!%p191_p9), 293888  }
  0x12   : > { %s1421_s10 = smov (!%p191_p9), 24   ;;  %s1422_s11 = smov (!%p191_p9), 84   ;;  %vm1427_vm15 = vmmov (!%p191_p9), 0  }
  0x13   : > { %1144 = vmatpush3.bf16.msra.mxu0 (!%p191_p9), %v1327_v14  ;;  %s1423_s12 = smov (!%p191_p9), 100   ;;  %s1424_s13 = smov (!%p191_p9), 16  }
  0x14   : > { %1163 = vmatprep.subr.msk.bf16.mxu0 (!%p191_p9), %vm383_vm4, %v1328_v23  ;;  %s1425_s14 = smov (!%p191_p9), 32   ;;  %s1428_s15 = smov (!%p191_p9), 64  }
  0x15   : > { %s219_s30 = scalar_select %p218_p10, %s1481_s22, 1 }
  0x17   : > { %s1103_s6 = sshll.u32 %s219_s30, 4  ;;  %1146 = vmatpush3.bf16.msra.mxu0 %v492_v28  ;;  %s1416_s30 = smov 4  }
  0x18   : > { %s1513_s9 = scalar_lea.vmem %s1837_s0, %s1103_s6  ;;  %s1417_s6 = smov 92  }
  0x19   : > { %v1106_v0 = vld [vmem:[%s1513_s9] sm:$0xff]   ;;  %v226_v1 = vld [vmem:[%s1513_s9 + $0x8] sm:$0xf]  ;;  %v227_v29 = vld [vmem:[%s1513_s9 + $0xc] sm:$0x1]  ;;  %s1420_s9 = smov 88  }
  0x1a   : > { %v1520_v3 = vunpack.c.l.bf16 %v1106_v0  ;;  %v1522_v4 = vunpack.c.h.bf16 %v1106_v0  ;;  %v1524_v5 = vunpack.c.l.bf16 %v226_v1  ;;  %v231_v33 = vunpack.c.l.bf16 %v227_v29 }
  0x1c   : > { %v235_v6 = vrot.slane %v1520_v3, 1  ;;  %v236_v7 = vrot.slane %v1522_v4, 1  ;;  %v239_v8 = vrot.slane %v1522_v4, 2  ;;  %v243_v9 = vrot.slane %v1522_v4, 3 }
  0x1d   : > { %v244_v10 = vrot.slane %v1524_v5, 3  ;;  %v287_v11 = vrot.slane %v1520_v3, 2  ;;  %v291_v12 = vrot.slane %v1524_v5, 4  ;;  %v336_v24 = vrot.slane %v1520_v3, 5 }
  0x1e   : > { %v237_v13 = vsel %vm234_vm0, %v235_v6, %v236_v7  ;;  %v337_v25 = vrot.slane %v1522_v4, 5  ;;  %v343_v26 = vrot.slane %v1522_v4, 7  ;;  %v344_v27 = vrot.slane %v1524_v5, 7 }
  0x1f   : > { %v245_v15 = vsel %vm242_vm1, %v243_v9, %v244_v10  ;;  %v288_v16 = vsel %vm286_vm3, %v287_v11, %v239_v8  ;;  %v1538_v17 = vsel %vm247_vm2, %v243_v9, %v291_v12  ;;  %v1542_v18 = vsel %vm247_vm2, %v1520_v3, %v237_v13 }
  0x20   : > { %v1545_v19 = vsel %vm247_vm2, %v239_v8, %v245_v15  ;;  %v1548_v20 = vsel %vm247_vm2, %v235_v6, %v288_v16  ;;  %v340_v30 = vrot.slane %v1522_v4, 6  ;;  %v338_v31 = vsel %vm335_vm5, %v336_v24, %v337_v25 }
  0x21   : > { %v1231_v21 = vpack.i.bf16 %v1538_v17, %v1548_v20  ;;  %v1221_v22 = vpack.i.bf16 %v1545_v19, %v1542_v18  ;;  %v345_v32 = vsel %vm342_vm6, %v343_v26, %v344_v27  ;;  %v384_v36 = vrot.slane %v1520_v3, 6 }
  0x22   : > { %v347_v34 = vsel %vm247_vm2, %v338_v31, %v340_v30  ;;  %v348_v35 = vsel %vm247_vm2, %v345_v32, %v1524_v5  ;;  %v389_v37 = vrot.slane %v1524_v5, 1  ;;  %v390_v38 = vrot.slane %v231_v33, 1 }
  0x23   : > { %1232 = vrot.lane.b32.xlu1 %v1231_v21, %s1411_s16  ;;  %1222 = vrot.lane.b32.xlu0 %v1221_v22, %s1412_s17  ;;  %v1276_v39 = vpack.i.bf16 %v348_v35, %v347_v34  ;;  %v385_v40 = vsel %vm383_vm4, %v384_v36, %v340_v30  ;;  %vm706_vm1 = vcmask 785408  }
  0x24   : > { %v391_v41 = vsel %vm234_vm0, %v389_v37, %v390_v38  ;;  %v393_v42 = vsel %vm247_vm2, %v385_v40, %v343_v26  ;;  %vm703_vm0 = vcmask 523264  }
  0x25   : > { %v394_v43 = vsel %vm247_vm2, %v1524_v5, %v391_v41 }
  0x26   : > { %v1291_v44 = vpack.i.bf16 %v394_v43, %v393_v42 }
  0x27   : > { %1237 = vrot.lane.b32.xlu1 %v1221_v22, %s1413_s23  ;;  %1227 = vrot.lane.b32.xlu0 %v1221_v22, %s1414_s25 }
  0x2b   : > { %1247 = vrot.lane.b32.xlu1 %v1221_v22, %s1415_s26  ;;  %1242 = vrot.lane.b32.xlu0 %v1231_v21, %s1416_s30  ;;  %s215_s26 = sand.u32 1, %s1401_s19  }
  0x2c   : > { %s1063_s30 = sshll.u32 %s215_s26, 3 }
  0x2f   : > { %1257 = vrot.lane.b32.xlu1 %v1221_v22, %s1417_s6  ;;  %1252 = vrot.lane.b32.xlu0 %v1221_v22, %s1418_s7  ;;  %s1104_s6 = sshll.u32 %s1481_s22, 7  ;;  %s986_s22 = scalar_lea.sflag [#allocation3], %s215_s26 }
  0x33   : > { %1267 = vrot.lane.b32.xlu1 %v1231_v21, %s1419_s8  ;;  %1262 = vrot.lane.b32.xlu0 %v1221_v22, %s1420_s9  ;;  %s217_s8 = scalar_lea.vmem [#allocation2], %s1063_s30 }
  0x34   : > { %s1000_s9 = sshll.u32 %s217_s8, 4  ;;  %s1797_s9 = int_to_ptr.vmem [resolvable:$true] %s1000_s9 }
  0x37   : > { %1277 = vrot.lane.b32.xlu1 %v1276_v39, %s1421_s10  ;;  %1272 = vrot.lane.b32.xlu0 %v1221_v22, %s1422_s11 }
  0x3b   : > { %1282 = vrot.lane.b32.xlu0 %v1231_v21, %s1423_s12  ;;  %1287 = vrot.lane.b32.xlu1 %v1276_v39, %s1424_s13  ;;  %s1795_s12 = scalar_lea.hbm %s1842_s5, %s1104_s6  ;;  %s1347_s13 = scalar_lea.vmem %s1797_s9, 128 }
  0x3c   : > { %p1348_p11 = scmp.ne.s32.totalorder %s1797_s9, %s1347_s13 }
  0x3e   : > { %p1349_p12 = pnand %p1348_p11, %p1498_p5 }
  0x3f   : > { %1292 = vrot.lane.b32.xlu0 %v1291_v44, %s1425_s14 }
  0x40   : > { %p1350_p13 = pneg %p1349_p12 }
  0x95   : > { %v1233_v45 = vpop.permute.xlu1 %1232  ;;  %v1223_v46 = vpop.permute.xlu0 %1222 }
  0x96   : > { %v1225_v47 = vunpack.i.h.bf16 %v1223_v46  ;;  %v1224_v48 = vunpack.i.l.bf16 %v1223_v46  ;;  %v1235_v55 = vunpack.i.h.bf16 %v1233_v45  ;;  %v1234_v56 = vunpack.i.l.bf16 %v1233_v45 }
  0x98   : > { %v269_v49 = vsel %vm267_vm7, %v1545_v19, %v1225_v47  ;;  %v268_v50 = vsel %vm267_vm7, %v1542_v18, %v1224_v48 }
  0x99   : > { %v272_v51 = vsel %vm270_vm8, %v269_v49, %v1225_v47  ;;  %v271_v52 = vsel %vm270_vm8, %v268_v50, %v1224_v48  ;;  %v1238_v53 = vpop.permute.xlu1 %1237  ;;  %v1228_v54 = vpop.permute.xlu0 %1227 }
  0x9a   : > { %v275_v57 = vsel %vm273_vm9, %v272_v51, %v1225_v47  ;;  %v274_v58 = vsel %vm273_vm9, %v271_v52, %v1224_v48  ;;  %v1240_v59 = vunpack.i.h.bf16 %v1238_v53  ;;  %v1239_v60 = vunpack.i.l.bf16 %v1238_v53 }
  0x9b   : > { %v1230_v61 = vunpack.i.h.bf16 %v1228_v54  ;;  %v1229_v62 = vunpack.i.l.bf16 %v1228_v54 }
  0x9d   : > { %v322_v63 = vsel %vm264_vm10, %v1230_v61, %v1235_v55  ;;  %v321_v0 = vsel %vm264_vm10, %v1229_v62, %v1234_v56  ;;  %v1248_v1 = vpop.permute.xlu1 %1247  ;;  %v1243_v2 = vpop.permute.xlu0 %1242  ;;  %v277_v3 = vsel %vm276_vm11, %v274_v58, %v1229_v62  ;;  %v278_v4 = vsel %vm276_vm11, %v275_v57, %v1230_v61 }
  0x9e   : > { %v1250_v5 = vunpack.i.h.bf16 %v1248_v1  ;;  %v1249_v6 = vunpack.i.l.bf16 %v1248_v1  ;;  %v1245_v7 = vunpack.i.h.bf16 %v1243_v2  ;;  %v1244_v8 = vunpack.i.l.bf16 %v1243_v2 }
  0x9f   : > { %v323_v9 = vsel %vm267_vm7, %v321_v0, %v1239_v60  ;;  %v324_v10 = vsel %vm267_vm7, %v322_v63, %v1240_v59  ;;  %v280_v11 = vsel %vm279_vm12, %v277_v3, %v1229_v62  ;;  %v281_v12 = vsel %vm279_vm12, %v278_v4, %v1230_v61 }
  0xa0   : > { %v325_v13 = vsel %vm270_vm8, %v323_v9, %v1239_v60  ;;  %v326_v14 = vsel %vm270_vm8, %v324_v10, %v1240_v59  ;;  %v283_v15 = vsel %vm282_vm13, %v280_v11, %v1229_v62  ;;  %v284_v16 = vsel %vm282_vm13, %v281_v12, %v1230_v61 }
  0xa1   : > { %v327_v18 = vsel %vm273_vm9, %v325_v13, %v1244_v8  ;;  %v328_v19 = vsel %vm273_vm9, %v326_v14, %v1245_v7  ;;  %v1258_v21 = vpop.permute.xlu1 %1257  ;;  %v1253_v22 = vpop.permute.xlu0 %1252  ;;  %v450_v23 = vpack.c.bf16 %v284_v16, %v283_v15 }
  0xa2   : > { %v329_v24 = vsel %vm276_vm11, %v327_v18, %v1249_v6  ;;  %v330_v25 = vsel %vm276_vm11, %v328_v19, %v1250_v5  ;;  %v1260_v26 = vunpack.i.h.bf16 %v1258_v21  ;;  %v1259_v27 = vunpack.i.l.bf16 %v1258_v21  ;;  %v1329_v19 = vld [vmem:[%s1840_s3 + $0x80] sm:$0xff]  }
  0xa3   : > { %v1255_v28 = vunpack.i.h.bf16 %v1253_v22  ;;  %v1254_v29 = vunpack.i.l.bf16 %v1253_v22  ;;  %1147 = vmatprep.mubr.msk.bf16.mxu0 %vm478_vm14, %v450_v23  ;;  %v331_v30 = vsel %vm279_vm12, %v329_v24, %v1249_v6  ;;  %v332_v31 = vsel %vm279_vm12, %v330_v25, %v1250_v5  ;;  %v1330_v22 = vld [vmem:[%s1840_s3 + $0x88] sm:$0xff]   ;;  %v1648_v23 = vld [vmem:[%s1839_s2] ss:$0 sm:$0xff] }
  0xa4   : > { %v333_v32 = vsel %vm282_vm13, %v331_v30, %v1548_v20  ;;  %v334_v33 = vsel %vm282_vm13, %v332_v31, %v1538_v17  ;;  %v1426_v21 = vmov 0.0   ;;  %v1331_v25 = vld [vmem:[%s1840_s3 + $0x40] sm:$0xff]  }
  0xa5   : > { %v372_v34 = vsel %vm267_vm7, %v1255_v28, %v1260_v26  ;;  %v371_v35 = vsel %vm267_vm7, %v1254_v29, %v1259_v27  ;;  %v1268_v36 = vpop.permute.xlu1 %1267  ;;  %v1263_v37 = vpop.permute.xlu0 %1262  ;;  %v451_v38 = vpack.c.bf16 %v334_v33, %v333_v32  ;;  %1155 = vmatprep.subr.bf16.mxu0 %v1426_v21  ;;  %v1663_v30 = vld [vmem:[%s1839_s2 + $0x1] ss:$0 sm:$0xff]  ;;  %1116 = vmatprep.subr.bf16.mxu1 %v1331_v25 }
  0xa6   : > { %v1270_v39 = vunpack.i.h.bf16 %v1268_v36  ;;  %v1269_v40 = vunpack.i.l.bf16 %v1268_v36  ;;  %v1265_v41 = vunpack.i.h.bf16 %v1263_v37  ;;  %v1264_v42 = vunpack.i.l.bf16 %v1263_v37  ;;  %v1334_v36 = vld [vmem:[%s1840_s3 + $0x8] sm:$0xff]   ;;  %v1673_v37 = vld [vmem:[%s1839_s2 + $0x2] ss:$0 sm:$0xff] }
  0xa7   : > { %1148 = vmatmul.mubr.msk.bf16.vlgmr.msra.gmra.mrb[0].mxu0 %vm478_vm14, %v451_v38  ;;  %v374_v43 = vsel %vm270_vm8, %v372_v34, %v1260_v26  ;;  %v373_v20 = vsel %vm270_vm8, %v371_v35, %v1259_v27 }
  0xa8   : > { %v434_v49 = vsel %vm264_vm10, %v1265_v41, %v1270_v39  ;;  %v433_v50 = vsel %vm264_vm10, %v1264_v42, %v1269_v40  ;;  %v375_v51 = vsel %vm273_vm9, %v373_v20, %v1259_v27  ;;  %v376_v52 = vsel %vm273_vm9, %v374_v43, %v1260_v26  ;;  %1156 = vmatpush3.bf16.msra.mxu0 %v1329_v19  ;;  %v1332_v26 = vld [vmem:[%s1840_s3] sm:$0xff]   ;;  %v1333_v27 = vld [vmem:[%s1840_s3 + $0x48] sm:$0xff]   ;;  %v1335_v40 = vld [vmem:[%s1840_s3 + $0x50] sm:$0xff]  }
  0xa9   : > { %v1278_v44 = vpop.permute.xlu1 %1277  ;;  %v1273_v45 = vpop.permute.xlu0 %1272  ;;  %1157 = vmatprep.subr.bf16.mxu0 %v1426_v21  ;;  %1117 = vmatpush3.bf16.msra.mxu1 %v1332_v26 }
  0xaa   : > { %v1280_v17 = vunpack.i.h.bf16 %v1278_v44  ;;  %v1279_v46 = vunpack.i.l.bf16 %v1278_v44  ;;  %v1275_v47 = vunpack.i.h.bf16 %v1273_v45  ;;  %v1274_v48 = vunpack.i.l.bf16 %v1273_v45  ;;  %1118 = vmatprep.subr.bf16.mxu1 %v1333_v27 }
  0xac   : > { %v377_v53 = vsel %vm276_vm11, %v375_v51, %v1279_v46  ;;  %v378_v54 = vsel %vm276_vm11, %v376_v52, %v1280_v17  ;;  %v435_v55 = vsel %vm267_vm7, %v433_v50, %v1274_v48  ;;  %v436_v56 = vsel %vm267_vm7, %v434_v49, %v1275_v47  ;;  %1158 = vmatpush3.bf16.msra.mxu0 %v1330_v22 }
  0xad   : > { %v379_v57 = vsel %vm279_vm12, %v377_v53, %v1279_v46  ;;  %v380_v58 = vsel %vm279_vm12, %v378_v54, %v1280_v17  ;;  %v437_v59 = vsel %vm270_vm8, %v435_v55, %v1274_v48  ;;  %v1283_v60 = vpop.permute.xlu0 %1282  ;;  %v1288_v61 = vpop.permute.xlu1 %1287  ;;  %v438_v3 = vsel %vm270_vm8, %v436_v56, %v1275_v47  ;;  %1119 = vmatpush3.bf16.msra.mxu1 %v1334_v36  ;;  %v1337_v48 = vld [vmem:[%s1840_s3 + $0x58] sm:$0xff]  }
  0xae   : > { %v381_v62 = vsel %vm282_vm13, %v379_v57, %v1279_v46  ;;  %v382_v63 = vsel %vm282_vm13, %v380_v58, %v1280_v17  ;;  %v1285_v0 = vunpack.i.h.bf16 %v1283_v60  ;;  %v1284_v1 = vunpack.i.l.bf16 %v1283_v60  ;;  %v1336_v17 = vld [vmem:[%s1840_s3 + $0x10] sm:$0xff]   ;;  %1120 = vmatprep.subr.bf16.mxu1 %v1335_v40  ;;  %v1338_v56 = vld [vmem:[%s1840_s3 + $0x18] sm:$0xff]  }
  0xaf   : > { %v452_v2 = vpack.c.bf16 %v382_v63, %v381_v62  ;;  %v1290_v4 = vunpack.i.h.bf16 %v1288_v61  ;;  %v1289_v5 = vunpack.i.l.bf16 %v1288_v61 }
  0xb0   : > { %v439_v6 = vsel %vm273_vm9, %v437_v59, %v1284_v1  ;;  %v440_v7 = vsel %vm273_vm9, %v438_v3, %v1285_v0  ;;  %v1339_v59 = vld [vmem:[%s1840_s3 + $0x60] sm:$0xff]  }
  0xb1   : > { %v441_v8 = vsel %vm276_vm11, %v439_v6, %v1289_v5  ;;  %v442_v9 = vsel %vm276_vm11, %v440_v7, %v1290_v4  ;;  %v1293_v10 = vpop.permute.xlu0 %1292  ;;  %1151 = vmatprep.mubr.msk.bf16.mxu0 %vm478_vm14, %v452_v2  ;;  %1121 = vmatpush3.bf16.msra.mxu1 %v1336_v17  ;;  %v1340_v0 = vld [vmem:[%s1840_s3 + $0x20] sm:$0xff]  }
  0xb2   : > { %v443_v11 = vsel %vm279_vm12, %v441_v8, %v1289_v5  ;;  %v444_v12 = vsel %vm279_vm12, %v442_v9, %v1290_v4  ;;  %v1295_v13 = vunpack.i.h.bf16 %v1293_v10  ;;  %v1294_v14 = vunpack.i.l.bf16 %v1293_v10  ;;  %1122 = vmatprep.subr.bf16.mxu1 %v1337_v48 }
  0xb4   : > { %v445_v15 = vsel %vm282_vm13, %v443_v11, %v1294_v14  ;;  %v446_v16 = vsel %vm282_vm13, %v444_v12, %v1295_v13  ;;  %v1341_v12 = vld [vmem:[%s1840_s3 + $0x68] sm:$0xff]  }
  0xb5   : > { %v453_v18 = vpack.c.bf16 %v446_v16, %v445_v15  ;;  %1123 = vmatpush3.bf16.msra.mxu1 %v1338_v56  ;;  %v1342_v13 = vld [vmem:[%s1840_s3 + $0x28] sm:$0xff]  }
  0xb6   : > { %1124 = vmatprep.subr.bf16.mxu1 %v1339_v59 }
  0xb7   : > { %1152 = vmatmul.mubr.msk.bf16.gmra.mrb[4].mxu0 %vm478_vm14, %v453_v18 }
  0xb8   : > { %1159 = vmatprep.mubr.msk.bf16.mxu0 %vm1427_vm15, %v1426_v21 }
  0xb9   : > { %1125 = vmatpush3.bf16.msra.mxu1 %v1340_v0 }
  0xba   : > { %1126 = vmatprep.subr.bf16.mxu1 %v1341_v12 }
  0xbd   : > { %1127 = vmatpush3.bf16.msra.mxu1 %v1342_v13 }
 0x17a   : > { %v1149_v24 = vpop.f32.mrb[0].mxu0 }
 0x17b   : > { %v537_v28 = vadd.f32 %v1149_v24, %v1648_v23  ;;  %v528_v29 = vpop.f32.mrb[1].mxu0 }
 0x17c   : > { %v529_v31 = vadd.f32 %v1648_v23, %v528_v29  ;;  %v1150_v32 = vpop.f32.mrb[2].mxu0 }
 0x17d   : > { %v561_v33 = vmax.f32 %v537_v28, 0.0  ;;  %v540_v34 = vadd.f32 %v1150_v32, %v1648_v23  ;;  %v531_v35 = vpop.f32.mrb[3].mxu0 }
 0x17e   : > { %v559_v38 = vmax.f32 %v529_v31, 0.0  ;;  %v532_v39 = vadd.f32 %v1648_v23, %v531_v35  ;;  %v1344_v31 = vld [vmem:[%s1840_s3 + $0x30] sm:$0xff]  }
 0x17f   : > { %v573_v41 = vmul.f32 %v1663_v30, %v561_v33  ;;  %v562_v42 = vmax.f32 %v540_v34, 0.0 }
 0x180   : > { %v571_v43 = vmul.f32 %v1663_v30, %v559_v38  ;;  %v560_v20 = vmax.f32 %v532_v39, 0.0 }
 0x181   : > { %v585_v44 = vadd.f32 %v1673_v37, %v573_v41  ;;  %v574_v45 = vmul.f32 %v1663_v30, %v562_v42  ;;  %v1345_v41 = vld [vmem:[%s1840_s3 + $0x78] sm:$0xff]  }
 0x182   : > { %v1687_v46 = vadd.f32 %v1673_v37, %v571_v43  ;;  %v572_v47 = vmul.f32 %v1663_v30, %v560_v20 }
 0x183   : > { %v628_v49 = vrot.slane %v585_v44, 3  ;;  %v586_v50 = vadd.f32 %v1673_v37, %v574_v45  ;;  %v625_v54 = vrot.slane %v585_v44, 7 }
 0x184   : > { %v1695_v51 = vadd.f32 %v1673_v37, %v572_v47 }
 0x185   : > { %v635_v52 = vrot.slane %v586_v50, 3  ;;  %v1296_v53 = vpack.i.bf16 %v586_v50, %v585_v44  ;;  %v630_v55 = vsel %vm342_vm6, 0.0, %v628_v49  ;;  %v632_v57 = vrot.slane %v586_v50, 7 }
 0x186   : > { %v639_v58 = vrot.slane %v630_v55, 4  ;;  %v627_v62 = vsel %vm342_vm6, 0.0, %v625_v54 }
 0x187   : > { %1297 = vrot.lane.b32.xlu1 %v1296_v53, %s1425_s14  ;;  %v637_v60 = vsel %vm342_vm6, 0.0, %v635_v52  ;;  %v634_v63 = vsel %vm342_vm6, 0.0, %v632_v57 }
 0x188   : > { %v642_v61 = vrot.slane %v637_v60, 4  ;;  %v1712_v2 = vsel %vm247_vm2, %v627_v62, %v639_v58 }
 0x18a   : > { %v1153_v1 = vpop.f32.mrb[4].mxu0  ;;  %v1715_v3 = vsel %vm247_vm2, %v634_v63, %v642_v61 }
 0x18b   : > { %v553_v4 = vadd.f32 %v1153_v1, %v1648_v23  ;;  %v544_v5 = vpop.f32.mrb[5].mxu0  ;;  %v1321_v6 = vpack.i.bf16 %v1715_v3, %v1712_v2 }
 0x18c   : > { %v545_v7 = vadd.f32 %v1648_v23, %v544_v5  ;;  %v1154_v8 = vpop.f32.mrb[6].mxu0 }
 0x18d   : > { %v565_v9 = vmax.f32 %v553_v4, 0.0  ;;  %v556_v10 = vadd.f32 %v1154_v8, %v1648_v23  ;;  %v547_v11 = vpop.f32.mrb[7].mxu0 }
 0x18e   : > { %v563_v14 = vmax.f32 %v545_v7, 0.0  ;;  %v548_v15 = vadd.f32 %v1648_v23, %v547_v11  ;;  %v1343_v23 = vld [vmem:[%s1840_s3 + $0x70] sm:$0xff]  }
 0x18f   : > { %v577_v16 = vmul.f32 %v1663_v30, %v565_v9  ;;  %v566_v18 = vmax.f32 %v556_v10, 0.0  ;;  %1128 = vmatprep.subr.bf16.mxu1 %v1343_v23 }
 0x190   : > { %v575_v19 = vmul.f32 %v1663_v30, %v563_v14  ;;  %v564_v21 = vmax.f32 %v548_v15, 0.0  ;;  %1129 = vmatpush3.bf16.msra.mxu1 %v1344_v31 }
 0x191   : > { %v589_v22 = vadd.f32 %v1673_v37, %v577_v16  ;;  %v578_v24 = vmul.f32 %v1663_v30, %v566_v18  ;;  %1130 = vmatprep.subr.bf16.mxu1 %v1345_v41 }
 0x192   : > { %v587_v25 = vadd.f32 %v1673_v37, %v575_v19  ;;  %v576_v26 = vmul.f32 %v1663_v30, %v564_v21 }
 0x193   : > { %v590_v27 = vadd.f32 %v1673_v37, %v578_v24  ;;  %v618_v28 = vrot.slane %v589_v22, 4  ;;  %v595_v29 = vrot.slane %v589_v22, 3  ;;  %v592_v36 = vrot.slane %v589_v22, 7 }
 0x194   : > { %v588_v32 = vadd.f32 %v1673_v37, %v576_v26  ;;  %v611_v33 = vrot.slane %v587_v25, 4  ;;  %v1346_v37 = vld [vmem:[%s1840_s3 + $0x38] sm:$0xff]  }
 0x195   : > { %v720_v34 = vpack.c.bf16 %v590_v27, %v589_v22  ;;  %v620_v35 = vrot.slane %v590_v27, 4  ;;  %v622_v38 = vsel %vm247_vm2, 0.0, %v618_v28  ;;  %v597_v39 = vsel %vm342_vm6, 0.0, %v595_v29  ;;  %1131 = vmatpush3.bf16.msra.mxu1 %v1346_v37 }
 0x196   : > { %v614_v30 = vrot.slane %v588_v32, 4  ;;  %v599_v40 = vrot.slane %v590_v27, 7  ;;  %v646_v43 = vrot.slane %v590_v27, 3  ;;  %v650_v20 = vrot.slane %v597_v39, 4 }
 0x197   : > { %1160 = vmatmul.mubr.msk.bf16.vlgmr.msra.gmra.mrb[8].mxu0 %vm282_vm13, %v720_v34  ;;  %v623_v42 = vsel %vm247_vm2, %v618_v28, %v620_v35  ;;  %v616_v44 = vsel %vm247_vm2, 0.0, %v611_v33  ;;  %v1316_v48 = vpack.i.bf16 %v588_v32, %v587_v25  ;;  %v594_v54 = vsel %vm342_vm6, 0.0, %v592_v36  ;;  %v1076_v35 = vld [vmem:[%s1841_s4] ss:$0 sm:$0xff] }
 0x198   : > { %v1301_v45 = vpack.i.bf16 %v623_v42, %v622_v38  ;;  %v601_v17 = vsel %vm342_vm6, 0.0, %v599_v40  ;;  %v617_v47 = vsel %vm247_vm2, %v611_v33, %v614_v30  ;;  %v648_v49 = vsel %vm342_vm6, 0.0, %v646_v43  ;;  %v1096_v43 = vld [vmem:[%s1841_s4 + $0x1] ss:$0 sm:$0xff] }
 0x199   : > { %v606_v50 = vrot.slane %v601_v17, 4  ;;  %v1306_v52 = vpack.i.bf16 %v617_v47, %v616_v44  ;;  %v653_v53 = vrot.slane %v648_v49, 4  ;;  %v655_v56 = vsel %vm247_vm2, %v594_v54, %v650_v20 }
 0x19a   : > { %1302 = vrot.lane.b32.xlu0 %v1301_v45, %s1428_s15  ;;  %v603_v61 = vrot.slane %v594_v54, 4  ;;  %v1097_v45 = vld [vmem:[%s1841_s4 + $0x2] ss:$0 sm:$0xff] }
 0x19b   : > { %v609_v55 = vsel %vm247_vm2, %v597_v39, %v606_v50  ;;  %v656_v57 = vsel %vm247_vm2, %v601_v17, %v653_v53 }
 0x19c   : > { %v1311_v58 = vpack.i.bf16 %v656_v57, %v655_v56  ;;  %v608_v4 = vsel %vm247_vm2, 0.0, %v603_v61 }
 0x19e   : > { %1307 = vrot.lane.b32.xlu0 %v1306_v52, %s1425_s14  ;;  %1312 = vrot.lane.b32.xlu1 %v1311_v58, %s1428_s15 }
 0x1a2   : > { %1322 = vrot.lane.b32.xlu0 %v1321_v6, %s1418_s7  ;;  %1317 = vrot.lane.b32.xlu1 %v1316_v48, %s1418_s7 }
 0x1f9   : > { %v1298_v60 = vpop.permute.xlu1 %1297 }
 0x1fa   : > { %v1300_v63 = vunpack.i.h.bf16 %v1298_v60  ;;  %v1299_v0 = vunpack.i.l.bf16 %v1298_v60 }
 0x1fc   : > { %v709_v15 = vsel %vm282_vm13, %v1687_v46, %v1299_v0  ;;  %v710_v16 = vsel %vm282_vm13, %v1695_v51, %v1300_v63 }
 0x20c   : > { %v1303_v59 = vpop.permute.xlu0 %1302 }
 0x20d   : > { %v1305_v6 = vunpack.i.h.bf16 %v1303_v59  ;;  %v1304_v10 = vunpack.i.l.bf16 %v1303_v59 }
 0x210   : > { %v1308_v62 = vpop.permute.xlu0 %1307  ;;  %v1313_v1 = vpop.permute.xlu1 %1312 }
 0x211   : > { %v1310_v2 = vunpack.i.h.bf16 %v1308_v62  ;;  %v1309_v3 = vunpack.i.l.bf16 %v1308_v62  ;;  %v1315_v5 = vunpack.i.h.bf16 %v1313_v1  ;;  %v1314_v7 = vunpack.i.l.bf16 %v1313_v1 }
 0x213   : > { %v702_v8 = vsel %vm282_vm13, %v609_v55, %v1310_v2  ;;  %v701_v9 = vsel %vm282_vm13, %v608_v4, %v1309_v3  ;;  %v711_v24 = vsel %vm703_vm0, %v709_v15, %v1314_v7  ;;  %v712_v25 = vsel %vm703_vm0, %v710_v16, %v1315_v5 }
 0x214   : > { %v1323_v11 = vpop.permute.xlu0 %1322  ;;  %v1318_v12 = vpop.permute.xlu1 %1317  ;;  %v704_v21 = vsel %vm703_vm0, %v701_v9, %v1304_v10  ;;  %v705_v22 = vsel %vm703_vm0, %v702_v8, %v1305_v6 }
 0x215   : > { %v1325_v13 = vunpack.i.h.bf16 %v1323_v11  ;;  %v1324_v14 = vunpack.i.l.bf16 %v1323_v11  ;;  %v1320_v18 = vunpack.i.h.bf16 %v1318_v12  ;;  %v1319_v19 = vunpack.i.l.bf16 %v1318_v12 }
 0x217   : > { %v707_v26 = vsel %vm706_vm1, %v704_v21, %v1324_v14  ;;  %v708_v23 = vsel %vm706_vm1, %v705_v22, %v1325_v13  ;;  %v713_v27 = vsel %vm706_vm1, %v711_v24, %v1319_v19  ;;  %v714_v28 = vsel %vm706_vm1, %v712_v25, %v1320_v18 }
 0x218   : > { %v718_v29 = vpack.c.bf16 %v708_v23, %v707_v26  ;;  %v719_v31 = vpack.c.bf16 %v714_v28, %v713_v27 }
 0x21a   : > { %904 = vmatprep.mubr.bf16.mxu1 %v719_v31 }
 0x21b   : > { %905 = vmatmul.mubr.bf16.vlgmr.msra.gmra.mrb[0].mxu1 %v718_v29 }
 0x26a   : > { %v947_v46 = vpop.f32.mrb[8].mxu0 }
 0x26b   : > { %v1161_v51 = vpop.f32.mrb[9].mxu0 }
 0x26c   : > { %v950_v32 = vpop.f32.mrb[10].mxu0 }
 0x26d   : > { %v1162_v33 = vpop.f32.mrb[11].mxu0 }
 0x2ee   : > { %v1132_v34 = vpop.f32.mrb[0].mxu1 }
 0x2ef   : > { %v1133_v36 = vpop.f32.mrb[1].mxu1 }
 0x2f0   : > { %v1134_v30 = vadd.f32 %v1133_v36, %v1132_v34  ;;  %v1135_v38 = vpop.f32.mrb[2].mxu1 }
 0x2f1   : > { %v1136_v39 = vpop.f32.mrb[3].mxu1 }
 0x2f2   : > { %v907_v40 = vadd.f32 %v1134_v30, %v1076_v35  ;;  %v1137_v41 = vadd.f32 %v1136_v39, %v1135_v38 }
 0x2f4   : > { %v948_v37 = vadd.f32 %v947_v46, %v907_v40  ;;  %v910_v42 = vadd.f32 %v1137_v41, %v1076_v35 }
 0x2f6   : > { %v954_v20 = vmax.f32 %v948_v37, 0.0  ;;  %v951_v44 = vadd.f32 %v950_v32, %v910_v42 }
 0x2f8   : > { %v960_v17 = vmul.f32 %v1096_v43, %v954_v20  ;;  %v955_v47 = vmax.f32 %v951_v44, 0.0 }
 0x2fa   : > { %v961_v48 = vmul.f32 %v1096_v43, %v955_v47  ;;  %v966_v49 = vadd.f32 %v1097_v45, %v960_v17 }
 0x2fc   : > { %v969_v50 = vrot.slane %v966_v49, 4  ;;  %v967_v52 = vadd.f32 %v1097_v45, %v961_v48 }
 0x2fe   : > { %970 = vrot.lane.b32.xlu1 %v969_v50, %s1428_s15  ;;  %v974_v53 = vrot.slane %v967_v52, 4 }
 0x300   : > { %975 = vrot.lane.b32.xlu0 %v974_v53, %s1428_s15  ;;  %s1429_s15 = smov [#allocation2]  }
 0x301   : > { %s1351_s7 = sshll.u32 %s1429_s15, 4  ;;  %s1352_s7 = int_to_ptr.vmem [resolvable:$false] %s1351_s7 }
 0x302   : > { %s1353_s14 = scalar_lea.vmem %s1352_s7, 256  ;;  %p1354_p0 = scmp.lt.s32.totalorder %s1797_s9, %s1352_s7 }
 0x303   : > { %p1355_p1 = scmp.lt.s32.totalorder %s1353_s14, %s1347_s13 }
 0x305   : > { %p1356_p2 = por %p1355_p1, %p1354_p0 }
 0x307   : > { %p1357_p3 = pnand %p1356_p2, %p1350_p13 }
 0x370   : > { %v971_v54 = vpop.permute.xlu1 %970 }
 0x371   : > { %v978_v56 = vsel %vm703_vm0, %v966_v49, %v971_v54 }
 0x372   : > { %v976_v55 = vpop.permute.xlu0 %975 }
 0x373   : > { %v979_v57 = vsel %vm703_vm0, %v967_v52, %v976_v55 }
 0x374   : > { %v982_v58 = vcombine.low %v978_v56, %v979_v57 }
 0x376   : > { %984 = vst [vmem:[%s217_s8] sm:$0xff] %v982_v58 }
 0x377   : > { %1360 = shalt.err (!%p1357_p3)
}
 0x378   : > { %s1361_s16 = scalar_lea.hbm %s1795_s12, 128  ;;  %s1365_s25 = scalar_lea.hbm %s1842_s5, 256 }
 0x379   : > { %p1362_p4 = scmp.ne.s32.totalorder %s1795_s12, %s1361_s16  ;;  %p1366_p9 = scmp.lt.u32.totalorder %s1795_s12, %s1842_s5 }
 0x37a   : > { %p1367_p10 = scmp.lt.u32.totalorder %s1365_s25, %s1361_s16  ;;  %p1369_p12 = scmp.lt.u32.totalorder %s1361_s16, %s1795_s12 }
 0x37b   : > { %p1363_p7 = pnand %p1362_p4, %p1498_p5 }
 0x37c   : > { %p1368_p11 = por %p1367_p10, %p1366_p9 }
 0x37d   : > { %p1364_p8 = pneg %p1363_p7 }
 0x37e   : > { %p1370_p13 = por %p1369_p12, %p1368_p11 }
 0x380   : > { %p1371_p0 = pnand %p1370_p13, %p1364_p8 }
 0x382   : > { %1374 = shalt.err (!%p1371_p0)
}
 0x383   : > { %1164 = dma.vmem_to_hbm [thread:$0]  (%p1498_p5), %s1797_s9, 128, %s1795_s12, %s986_s22  }
 0x384 PF: > { %p1170_p1 = scmp.ge.s32.totalorder %s1409_s21, 2  ;;  %s1012_s6 = sand.u32 1, %s1397_s18  }
 0x385   : > { %s1013_s8 = scalar_lea.sflag [#allocation3], %s1012_s6 }
 0x386   : > { %p1167_p2 = pnand %p1170_p1, %p1502_p6 }
 0x388   : > { %1392 = dma.done.wait (!%p1167_p2), %s1013_s8, 128  }
 0x389   : > { %1394 = vsyncadd (!%p1167_p2), %s1013_s8, 4294967168  ;;  %p15_p3 = scmp.ge.s32.totalorder %s1485_s24, 4   ;;  %s1845_s18 = smov %s1401_s19 }
 0x38a   : > { %s1846_s19 = smov %s1405_s20  ;;  %s1847_s20 = smov %s1496_s27 }
 0x38b   : > { %s1848_s21 = smov %s1485_s24  ;;  %17 = sbr.rel (!%p15_p3) target bundleno = 3 (0x3), region = 75 }
 0x392   :  { %1018 = vsyncpa [#allocation3], 1 }
 0x393   :  { %1020 = vsyncpa [#allocation3 + $0x1], 1 }

</bundles_post_ra>
